<compile_context>
chip_gen: v6e
topology: v6e:2x2x1
jax: 0.10.0
libtpu: 0.0.40
codegen_flags: <defaults>
</compile_context>

<pallas_src>
import functools

import jax
import jax.numpy as jnp
import numpy as np
from jax import lax
from jax.experimental import pallas as pl
from jax.experimental.pallas import tpu as pltpu


# ------------------------------ shared helpers ------------------------------ #

def _layer_norm(x, gamma, beta, eps=1e-5):
    """LayerNorm over last dim (PyTorch semantics: biased var, eps inside sqrt)."""
    mean = jnp.mean(x, axis=-1, keepdims=True)
    xc = x - mean
    var = jnp.mean(xc * xc, axis=-1, keepdims=True)
    return xc * lax.rsqrt(var + eps) * gamma + beta


def _positional_encoding(seq_len, hidden):
    """Matches Transformer._generate_positional_encoding (hidden must be even)."""
    position = jnp.arange(seq_len, dtype=jnp.float32)[:, None]                  # (S, 1)
    div_term = jnp.exp(jnp.arange(0, hidden, 2, dtype=jnp.float32)
                       * (-(np.log(10000.0) / hidden)))                         # (H/2,)
    pe = jnp.zeros((seq_len, hidden), jnp.float32)
    pe = pe.at[:, 0::2].set(jnp.sin(position * div_term))
    pe = pe.at[:, 1::2].set(jnp.cos(position * div_term))
    return pe


# ------------------------------- Pallas kernel ------------------------------ #

def _transformer_kernel(
    x_ref,        # (T, I)      flattened tokens, T = B*S
    pe_ref,       # (T, H)      positional encoding + embedding bias (pre-folded)
    emb_w_ref,    # (I, H)      embedding weight (transposed)
    inp_w_ref,    # (1, H, 3H)  this layer's MHA in_proj weight (q|k|v stacked)
    outp_w_ref,   # (1, H, H)   this layer's MHA out_proj weight
    ff1_w_ref,    # (1, H, F)   bf16
    ff2_w_ref,    # (1, F, H)   bf16
    bias_ref,     # (1, 1, F+9H) packed per-layer vectors
    dec_w_ref,    # (H, O)      decoder weight (transposed)
    dec_b_ref,    # (1, O)
    out_ref,      # (B, O)
    h_scr,        # VMEM (T, H) persistent hidden state across layers
    *,
    batch, seq, num_heads, hidden, ffn,
):
    l = pl.program_id(0)
    T = batch * seq
    H = hidden
    F = ffn
    hd = H // num_heads
    scale = 1.0 / float(np.sqrt(hd))

    # ---- first grid step: embedding + positional encoding ----
    @pl.when(l == 0)
    def _():
        h_scr[...] = (jnp.dot(x_ref[...], emb_w_ref[...],
                              preferred_element_type=jnp.float32)
                      + pe_ref[...])                                   # (T, H)

    # ---- unpack this layer's packed vectors (static lane slices of the ref) ----
    ff1_b  = bias_ref[0, :, 0:F]                                       # (1, F)
    inp_b  = bias_ref[0, :, F:F + 3 * H]                               # (1, 3H)
    outp_b = bias_ref[0, :, F + 3 * H:F + 4 * H]                       # (1, H)
    ln1_g  = bias_ref[0, :, F + 4 * H:F + 5 * H]
    ln1_b  = bias_ref[0, :, F + 5 * H:F + 6 * H]
    ff2_b  = bias_ref[0, :, F + 6 * H:F + 7 * H]
    ln2_g  = bias_ref[0, :, F + 7 * H:F + 8 * H]
    ln2_b  = bias_ref[0, :, F + 8 * H:F + 9 * H]

    h = h_scr[...]                                                     # (T, H)

    # ---- multi-head self-attention: all (batch, head) blocks in one go ----
    qkv = (jnp.dot(h, inp_w_ref[0], preferred_element_type=jnp.float32)
           + inp_b)                                                    # (T, 3H)

    def to_heads(t):  # (T, H) -> (B*nh, S, hd)
        return (t.reshape(batch, seq, num_heads, hd)
                 .transpose(0, 2, 1, 3)
                 .reshape(batch * num_heads, seq, hd))

    q = to_heads(qkv[:, 0:H] * scale)          # scale folded into q once
    k = to_heads(qkv[:, H:2 * H])
    v = to_heads(qkv[:, 2 * H:3 * H])

    s = jnp.einsum('bqd,bkd->bqk', q, k,
                   preferred_element_type=jnp.float32)                 # (B*nh, S, S)
    s = s - jnp.max(s, axis=-1, keepdims=True)
    p = jnp.exp(s)
    p = p * pl.reciprocal(jnp.sum(p, axis=-1, keepdims=True), approx=True)
    a = jnp.einsum('bqk,bkd->bqd', p, v,
                   preferred_element_type=jnp.float32)                 # (B*nh, S, hd)
    a = (a.reshape(batch, num_heads, seq, hd)
          .transpose(0, 2, 1, 3)
          .reshape(T, H))                                              # (T, H)

    attn = (jnp.dot(a, outp_w_ref[0], preferred_element_type=jnp.float32)
            + outp_b)                                                  # (T, H)
    h = _layer_norm(h + attn, ln1_g, ln1_b)

    # ---- feed-forward (bf16 weights, f32 accumulation, ReLU) ----
    ff = (jnp.dot(h.astype(jnp.bfloat16), ff1_w_ref[0],
                  preferred_element_type=jnp.float32) + ff1_b)         # (T, F)
    ff = jnp.maximum(ff, 0.0)
    ff = (jnp.dot(ff.astype(jnp.bfloat16), ff2_w_ref[0],
                  preferred_element_type=jnp.float32) + ff2_b)         # (T, H)
    h = _layer_norm(h + ff, ln2_g, ln2_b)

    h_scr[...] = h

    # ---- last grid step: last token of each sequence -> decoder ----
    @pl.when(l == pl.num_programs(0) - 1)
    def _():
        rows = [h[b * seq + seq - 1:b * seq + seq, :] for b in range(batch)]
        h_last = jnp.concatenate(rows, axis=0)                         # (B, H)
        out_ref[...] = (jnp.dot(h_last, dec_w_ref[...],
                                preferred_element_type=jnp.float32)
                        + dec_b_ref[...])


# ------------------------------- JAX wrapper -------------------------------- #

@functools.partial(jax.jit, static_argnames=("num_heads",))
def transformer_forward(x, params, *, num_heads):
    """x: (1, B, S, input_size) -> (B, output_size). Matches Transformer.forward."""
    x = jnp.squeeze(x.astype(jnp.float32), axis=0)         # (B, S, I)
    B, S, I = x.shape
    H = params["emb_w_t"].shape[1]
    O = params["dec_w_t"].shape[1]
    F = params["ff1_w_t"].shape[2]
    L = params["in_proj_w_t"].shape[0]
    T = B * S

    pe = _positional_encoding(S, H)                         # (S, H)
    x2d = x.reshape(T, I)                                   # row = b*S + s
    pe_emb = jnp.tile(pe, (B, 1)) + params["emb_b"]         # fold emb bias in

    # Pack every per-layer vector into one slab (fewer, larger DMAs):
    # [ff1_b | in_proj_b | out_proj_b | ln1_g | ln1_b | ff2_b | ln2_g | ln2_b]
    bias = jnp.concatenate(
        [params["ff1_b"], params["in_proj_b"], params["out_proj_b"],
         params["ln1_g"], params["ln1_b"], params["ff2_b"],
         params["ln2_g"], params["ln2_b"]], axis=-1)        # (L, 1, F + 9H)

    kernel = functools.partial(_transformer_kernel, batch=B, seq=S,
                               num_heads=num_heads, hidden=H, ffn=F)

    grid_spec = pltpu.PrefetchScalarGridSpec(
        num_scalar_prefetch=0,
        grid=(L,),
        in_specs=[
            pl.BlockSpec((T, I), lambda l: (0, 0)),                # x (loaded once)
            pl.BlockSpec((T, H), lambda l: (0, 0)),                # pe + emb_b
            pl.BlockSpec((I, H), lambda l: (0, 0)),                # emb_w
            pl.BlockSpec((1, H, 3 * H), lambda l: (l, 0, 0)),      # in_proj_w[l]
            pl.BlockSpec((1, H, H), lambda l: (l, 0, 0)),          # out_proj_w[l]
            pl.BlockSpec((1, H, F), lambda l: (l, 0, 0)),          # ff1_w[l] bf16
            pl.BlockSpec((1, F, H), lambda l: (l, 0, 0)),          # ff2_w[l] bf16
            pl.BlockSpec((1, 1, F + 9 * H), lambda l: (l, 0, 0)),  # packed biases[l]
            pl.BlockSpec((H, O), lambda l: (0, 0)),                # dec_w
            pl.BlockSpec((1, O), lambda l: (0, 0)),                # dec_b
        ],
        out_specs=pl.BlockSpec((B, O), lambda l: (0, 0)),
        scratch_shapes=[pltpu.VMEM((T, H), jnp.float32)],          # persistent h
    )

    return pl.pallas_call(
        kernel,
        out_shape=jax.ShapeDtypeStruct((B, O), jnp.float32),
        grid_spec=grid_spec,
        compiler_params=pltpu.CompilerParams(
            dimension_semantics=("arbitrary",)),
    )(
        x2d, pe_emb,
        params["emb_w_t"],
        params["in_proj_w_t"], params["out_proj_w_t"],
        params["ff1_w_t_bf16"], params["ff2_w_t_bf16"],
        bias,
        params["dec_w_t"], params["dec_b"],
    )


# --------------------------- deterministic params --------------------------- #

def init_params(key, input_size, hidden_size, ffn_size, num_layers, output_size):
    H, F = hidden_size, ffn_size

    def unif(k, shape, fan_in):
        bound = 1.0 / np.sqrt(fan_in)
        return jax.random.uniform(k, shape, minval=-bound, maxval=bound,
                                  dtype=jnp.float32)

    keys = jax.random.split(key, 2 + num_layers)
    ke1, ke2 = jax.random.split(keys[0])
    emb_w = unif(ke1, (H, input_size), input_size)          # PyTorch layout (out, in)
    emb_b = unif(ke2, (1, H), input_size)
    kd1, kd2 = jax.random.split(keys[1])
    dec_w = unif(kd1, (output_size, H), H)
    dec_b = unif(kd2, (1, output_size), H)

    ipw, ipb, opw, opb = [], [], [], []
    f1w, f1b, f2w, f2b = [], [], [], []
    l1g, l1b_, l2g, l2b_ = [], [], [], []
    for l in range(num_layers):
        ks = jax.random.split(keys[2 + l], 8)
        ipw.append(unif(ks[0], (3 * H, H), H))
        ipb.append(unif(ks[1], (1, 3 * H), H))
        opw.append(unif(ks[2], (H, H), H))
        opb.append(unif(ks[3], (1, H), H))
        f1w.append(unif(ks[4], (F, H), H))
        f1b.append(unif(ks[5], (1, F), H))
        f2w.append(unif(ks[6], (H, F), F))
        f2b.append(unif(ks[7], (1, H), F))
        l1g.append(jnp.ones((1, H), jnp.float32))
        l1b_.append(jnp.zeros((1, H), jnp.float32))
        l2g.append(jnp.ones((1, H), jnp.float32))
        l2b_.append(jnp.zeros((1, H), jnp.float32))

    ff1_w_t = jnp.stack([w.T for w in f1w])                   # (L, H, F) f32 master
    ff2_w_t = jnp.stack([w.T for w in f2w])                   # (L, F, H) f32 master

    return {
        "emb_w_t": emb_w.T,                                   # (I, H)
        "emb_b": emb_b,                                       # (1, H)
        "in_proj_w_t": jnp.stack([w.T for w in ipw]),         # (L, H, 3H)
        "in_proj_b": jnp.stack(ipb),                          # (L, 1, 3H)
        "out_proj_w_t": jnp.stack([w.T for w in opw]),        # (L, H, H)
        "out_proj_b": jnp.stack(opb),                         # (L, 1, H)
        "ln1_g": jnp.stack(l1g), "ln1_b": jnp.stack(l1b_),    # (L, 1, H)
        "ln2_g": jnp.stack(l2g), "ln2_b": jnp.stack(l2b_),    # (L, 1, H)
        "ff1_w_t": ff1_w_t,                                   # (L, H, F) f32 (reference)
        "ff1_w_t_bf16": ff1_w_t.astype(jnp.bfloat16),         # (L, H, F) bf16 (kernel)
        "ff1_b": jnp.stack(f1b),                              # (L, 1, F)
        "ff2_w_t": ff2_w_t,                                   # (L, F, H) f32 (reference)
        "ff2_w_t_bf16": ff2_w_t.astype(jnp.bfloat16),         # (L, F, H) bf16 (kernel)
        "ff2_b": jnp.stack(f2b),                              # (L, 1, H)
        "dec_w_t": dec_w.T,                                   # (H, O)
        "dec_b": dec_b,                                       # (1, O)
    }


# ----------------------------- pure-JAX reference ---------------------------- #

def reference_forward(x, params, num_heads):
    hp = lax.Precision.HIGHEST
    x = jnp.squeeze(x.astype(jnp.float32), axis=0)          # (B, S, I)
    B, S, _ = x.shape
    H = params["emb_w_t"].shape[1]
    L = params["in_proj_w_t"].shape[0]
    hd = H // num_heads

    pe = _positional_encoding(S, H)
    h = jnp.einsum("bsi,ih->bsh", x, params["emb_w_t"], precision=hp) + params["emb_b"]
    h = h + pe[None, :, :]

    for l in range(L):
        qkv = (jnp.einsum("bsh,hk->bsk", h, params["in_proj_w_t"][l], precision=hp)
               + params["in_proj_b"][l])
        q, k, v = jnp.split(qkv, 3, axis=-1)

        def heads(t):
            return t.reshape(B, S, num_heads, hd).transpose(0, 2, 1, 3)

        q, k, v = heads(q), heads(k), heads(v)
        s = jnp.einsum("bnqd,bnkd->bnqk", q, k, precision=hp) / np.sqrt(hd)
        p = jax.nn.softmax(s, axis=-1)
        a = jnp.einsum("bnqk,bnkd->bnqd", p, v, precision=hp)
        a = a.transpose(0, 2, 1, 3).reshape(B, S, H)
        a = (jnp.einsum("bsh,hk->bsk", a, params["out_proj_w_t"][l], precision=hp)
             + params["out_proj_b"][l])
        h = _layer_norm(h + a, params["ln1_g"][l], params["ln1_b"][l])

        ff = (jnp.einsum("bsh,hf->bsf", h, params["ff1_w_t"][l], precision=hp)
              + params["ff1_b"][l])
        ff = jnp.maximum(ff, 0.0)
        ff = (jnp.einsum("bsf,fh->bsh", ff, params["ff2_w_t"][l], precision=hp)
              + params["ff2_b"][l])
        h = _layer_norm(h + ff, params["ln2_g"][l], params["ln2_b"][l])

    return (jnp.einsum("bh,ho->bo", h[:, -1, :], params["dec_w_t"], precision=hp)
            + params["dec_b"])


# ------------------------------------ main ----------------------------------- #

if __name__ == "__main__":
    batch = 2
    seq = 8             # window_size
    input_size = 16
    hidden_size = 32
    num_heads = 4
    num_layers = 2
    output_size = 3
    ffn_size = 2048     # PyTorch TransformerEncoderLayer default dim_feedforward

    assert hidden_size % num_heads == 0 and hidden_size % 2 == 0

    key = jax.random.PRNGKey(0)
    key, pkey, xkey = jax.random.split(key, 3)
    params = init_params(pkey, input_size, hidden_size, ffn_size,
                         num_layers, output_size)
    x = jax.random.normal(xkey, (1, batch, seq, input_size), dtype=jnp.float32)

    out = transformer_forward(x, params, num_heads=num_heads)
    out = jax.block_until_ready(out)
    assert out.shape == (batch, output_size)

    ref = reference_forward(x, params, num_heads)
    np.testing.assert_allclose(np.asarray(out), np.asarray(ref),
                               rtol=5e-2, atol=5e-2)

    print("KERNEL_OK")
</pallas_src>

<mosaic_0001>
module attributes {stable_mosaic.version = 11 : i64} {
  func.func @_transformer_kernel(%arg0: i32, %arg1: memref<16x16xf32, #tpu.memory_space<vmem>>, %arg2: memref<16x32xf32, #tpu.memory_space<vmem>>, %arg3: memref<16x32xf32, #tpu.memory_space<vmem>>, %arg4: memref<1x32x96xf32, #tpu.memory_space<vmem>>, %arg5: memref<1x32x32xf32, #tpu.memory_space<vmem>>, %arg6: memref<1x32x2048xbf16, #tpu.memory_space<vmem>>, %arg7: memref<1x2048x32xbf16, #tpu.memory_space<vmem>>, %arg8: memref<1x1x2336xf32, #tpu.memory_space<vmem>>, %arg9: memref<32x3xf32, #tpu.memory_space<vmem>>, %arg10: memref<1x3xf32, #tpu.memory_space<vmem>>, %arg11: memref<2x3xf32, #tpu.memory_space<vmem>>, %arg12: memref<16x32xf32, #tpu.memory_space<vmem>>) attributes {dimension_semantics = [#tpu.dimension_semantics<arbitrary>], iteration_bounds = array<i64: 2>, scalar_prefetch = 0 : i64, scratch_operands = 1 : i64, tpu.core_type = #tpu.core_type<tc>, window_params = [{pipeline_mode = #tpu.pipeline_mode<synchronous>, transform_indices = @transform_0, window_bounds = array<i64: 16, 16>}, {pipeline_mode = #tpu.pipeline_mode<synchronous>, transform_indices = @transform_1, window_bounds = array<i64: 16, 32>}, {pipeline_mode = #tpu.pipeline_mode<synchronous>, transform_indices = @transform_2, window_bounds = array<i64: 16, 32>}, {transform_indices = @transform_3, window_bounds = array<i64: 1, 32, 96>}, {transform_indices = @transform_4, window_bounds = array<i64: 1, 32, 32>}, {transform_indices = @transform_5, window_bounds = array<i64: 1, 32, 2048>}, {transform_indices = @transform_6, window_bounds = array<i64: 1, 2048, 32>}, {transform_indices = @transform_7, window_bounds = array<i64: 1, 1, 2336>}, {pipeline_mode = #tpu.pipeline_mode<synchronous>, transform_indices = @transform_8, window_bounds = array<i64: 32, 3>}, {pipeline_mode = #tpu.pipeline_mode<synchronous>, transform_indices = @transform_9, window_bounds = array<i64: 1, 3>}, {pipeline_mode = #tpu.pipeline_mode<synchronous>, transform_indices = @transform_10, window_bounds = array<i64: 2, 3>}]} {
    %c0_i32 = arith.constant 0 : i32
    %0 = arith.cmpi eq, %arg0, %c0_i32 : i32
    %1 = arith.extui %0 : i1 to i32
    %c0_i32_0 = arith.constant 0 : i32
    %2 = arith.cmpi ne, %1, %c0_i32_0 : i32
    scf.if %2 {
      %c0_53 = arith.constant 0 : index
      %c0_54 = arith.constant 0 : index
      %119 = vector.load %arg1[%c0_53, %c0_54] : memref<16x16xf32, #tpu.memory_space<vmem>>, vector<16x16xf32>
      %c0_55 = arith.constant 0 : index
      %c0_56 = arith.constant 0 : index
      %120 = vector.load %arg3[%c0_55, %c0_56] : memref<16x32xf32, #tpu.memory_space<vmem>>, vector<16x32xf32>
      %cst_57 = arith.constant dense<0.000000e+00> : vector<16x32xf32>
      %121 = tpu.matmul %119, %120, %cst_57 {dimension_numbers = #tpu.dot_dimension_numbers<[1], [0], [0], [1], [0, 0, 1, 1], [], []>} : vector<16x16xf32>, vector<16x32xf32>, vector<16x32xf32> -> vector<16x32xf32>
      %c0_58 = arith.constant 0 : index
      %c0_59 = arith.constant 0 : index
      %122 = vector.load %arg2[%c0_58, %c0_59] : memref<16x32xf32, #tpu.memory_space<vmem>>, vector<16x32xf32>
      %123 = arith.addf %121, %122 : vector<16x32xf32>
      %c0_60 = arith.constant 0 : index
      %c0_61 = arith.constant 0 : index
      %124 = vector.load %arg12[%c0_60, %c0_61] : memref<16x32xf32, #tpu.memory_space<vmem>>, vector<16x32xf32>
      tpu.vector_store %arg12[%c0_60, %c0_61], %123 {strides = array<i32>} : memref<16x32xf32, #tpu.memory_space<vmem>>, vector<16x32xf32>,
    } else {
    }
    %c0 = arith.constant 0 : index
    %c0_1 = arith.constant 0 : index
    %c0_2 = arith.constant 0 : index
    %3 = vector.load %arg8[%c0, %c0_1, %c0_2] : memref<1x1x2336xf32, #tpu.memory_space<vmem>>, vector<1x1x2048xf32>
    %4 = vector.shape_cast %3 : vector<1x1x2048xf32> to vector<1x2048xf32>
    %c0_3 = arith.constant 0 : index
    %c0_4 = arith.constant 0 : index
    %c2048 = arith.constant 2048 : index
    %5 = vector.load %arg8[%c0_3, %c0_4, %c2048] : memref<1x1x2336xf32, #tpu.memory_space<vmem>>, vector<1x1x96xf32>
    %6 = vector.shape_cast %5 : vector<1x1x96xf32> to vector<1x96xf32>
    %c0_5 = arith.constant 0 : index
    %c0_6 = arith.constant 0 : index
    %c2144 = arith.constant 2144 : index
    %7 = vector.load %arg8[%c0_5, %c0_6, %c2144] : memref<1x1x2336xf32, #tpu.memory_space<vmem>>, vector<1x1x32xf32>
    %8 = vector.shape_cast %7 : vector<1x1x32xf32> to vector<1x32xf32>
    %c0_7 = arith.constant 0 : index
    %c0_8 = arith.constant 0 : index
    %c2176 = arith.constant 2176 : index
    %9 = vector.load %arg8[%c0_7, %c0_8, %c2176] : memref<1x1x2336xf32, #tpu.memory_space<vmem>>, vector<1x1x32xf32>
    %10 = vector.shape_cast %9 : vector<1x1x32xf32> to vector<1x32xf32>
    %c0_9 = arith.constant 0 : index
    %c0_10 = arith.constant 0 : index
    %c2208 = arith.constant 2208 : index
    %11 = vector.load %arg8[%c0_9, %c0_10, %c2208] : memref<1x1x2336xf32, #tpu.memory_space<vmem>>, vector<1x1x32xf32>
    %12 = vector.shape_cast %11 : vector<1x1x32xf32> to vector<1x32xf32>
    %c0_11 = arith.constant 0 : index
    %c0_12 = arith.constant 0 : index
    %c2240 = arith.constant 2240 : index
    %13 = vector.load %arg8[%c0_11, %c0_12, %c2240] : memref<1x1x2336xf32, #tpu.memory_space<vmem>>, vector<1x1x32xf32>
    %14 = vector.shape_cast %13 : vector<1x1x32xf32> to vector<1x32xf32>
    %c0_13 = arith.constant 0 : index
    %c0_14 = arith.constant 0 : index
    %c2272 = arith.constant 2272 : index
    %15 = vector.load %arg8[%c0_13, %c0_14, %c2272] : memref<1x1x2336xf32, #tpu.memory_space<vmem>>, vector<1x1x32xf32>
    %16 = vector.shape_cast %15 : vector<1x1x32xf32> to vector<1x32xf32>
    %c0_15 = arith.constant 0 : index
    %c0_16 = arith.constant 0 : index
    %c2304 = arith.constant 2304 : index
    %17 = vector.load %arg8[%c0_15, %c0_16, %c2304] : memref<1x1x2336xf32, #tpu.memory_space<vmem>>, vector<1x1x32xf32>
    %18 = vector.shape_cast %17 : vector<1x1x32xf32> to vector<1x32xf32>
    %c0_17 = arith.constant 0 : index
    %c0_18 = arith.constant 0 : index
    %19 = vector.load %arg12[%c0_17, %c0_18] : memref<16x32xf32, #tpu.memory_space<vmem>>, vector<16x32xf32>
    %c0_19 = arith.constant 0 : index
    %c0_20 = arith.constant 0 : index
    %c0_21 = arith.constant 0 : index
    %20 = vector.load %arg4[%c0_19, %c0_20, %c0_21] : memref<1x32x96xf32, #tpu.memory_space<vmem>>, vector<1x32x96xf32>
    %21 = vector.shape_cast %20 : vector<1x32x96xf32> to vector<32x96xf32>
    %cst = arith.constant dense<0.000000e+00> : vector<16x96xf32>
    %22 = tpu.matmul %19, %21, %cst {dimension_numbers = #tpu.dot_dimension_numbers<[1], [0], [0], [1], [0, 0, 1, 1], [], []>} : vector<16x32xf32>, vector<32x96xf32>, vector<16x96xf32> -> vector<16x96xf32>
    %23 = vector.broadcast %6 : vector<1x96xf32> to vector<16x96xf32>
    %24 = arith.addf %22, %23 : vector<16x96xf32>
    %25 = vector.extract_strided_slice %24 {offsets = [0, 0], sizes = [16, 32], strides = [1, 1]} : vector<16x96xf32> to vector<16x32xf32>
    %cst_22 = arith.constant 0.353553385 : f32
    %26 = vector.broadcast %cst_22 : f32 to vector<16x32xf32>
    %27 = arith.mulf %25, %26 : vector<16x32xf32>
    %28 = vector.shape_cast %27 : vector<16x32xf32> to vector<2x8x4x8xf32>
    %29 = tpu.transpose %28, [0, 2, 1, 3] : vector<2x8x4x8xf32> -> vector<2x4x8x8xf32>
    %30 = vector.shape_cast %29 : vector<2x4x8x8xf32> to vector<8x8x8xf32>
    %31 = vector.extract_strided_slice %24 {offsets = [0, 32], sizes = [16, 32], strides = [1, 1]} : vector<16x96xf32> to vector<16x32xf32>
    %32 = vector.shape_cast %31 : vector<16x32xf32> to vector<2x8x4x8xf32>
    %33 = tpu.transpose %32, [0, 2, 1, 3] : vector<2x8x4x8xf32> -> vector<2x4x8x8xf32>
    %34 = vector.shape_cast %33 : vector<2x4x8x8xf32> to vector<8x8x8xf32>
    %35 = vector.extract_strided_slice %24 {offsets = [0, 64], sizes = [16, 32], strides = [1, 1]} : vector<16x96xf32> to vector<16x32xf32>
    %36 = vector.shape_cast %35 : vector<16x32xf32> to vector<2x8x4x8xf32>
    %37 = tpu.transpose %36, [0, 2, 1, 3] : vector<2x8x4x8xf32> -> vector<2x4x8x8xf32>
    %38 = vector.shape_cast %37 : vector<2x4x8x8xf32> to vector<8x8x8xf32>
    "tpu.trace_start"() <{level = 10 : i32, message = "bqd,bkd->bqk"}> : () -> ()
    %cst_23 = arith.constant dense<0.000000e+00> : vector<8x8x8xf32>
    %39 = tpu.matmul %30, %34, %cst_23 {dimension_numbers = #tpu.dot_dimension_numbers<[2], [2], [1], [1], [0, 0, 0, 1, 1, 1], [0], [0]>} : vector<8x8x8xf32>, vector<8x8x8xf32>, vector<8x8x8xf32> -> vector<8x8x8xf32>
    "tpu.trace_stop"() : () -> ()
    %cst_24 = arith.constant dense<0xFF800000> : vector<8x8xf32>
    %40 = vector.multi_reduction <maximumf>, %39, %cst_24 [2] : vector<8x8x8xf32> to vector<8x8xf32>
    %41 = vector.shape_cast %40 : vector<8x8xf32> to vector<8x8x1xf32>
    %42 = vector.broadcast %41 : vector<8x8x1xf32> to vector<8x8x8xf32>
    %43 = arith.subf %39, %42 : vector<8x8x8xf32>
    %44 = math.exp %43 : vector<8x8x8xf32>
    %cst_25 = arith.constant dense<0.000000e+00> : vector<8x8xf32>
    %45 = vector.multi_reduction <add>, %44, %cst_25 [2] : vector<8x8x8xf32> to vector<8x8xf32>
    %46 = vector.shape_cast %45 : vector<8x8xf32> to vector<8x8x1xf32>
    %47 = tpu.reciprocal %46 {approx = true} : vector<8x8x1xf32> -> vector<8x8x1xf32>
    %48 = vector.broadcast %47 : vector<8x8x1xf32> to vector<8x8x8xf32>
    %49 = arith.mulf %44, %48 : vector<8x8x8xf32>
    "tpu.trace_start"() <{level = 10 : i32, message = "bqk,bkd->bqd"}> : () -> ()
    %cst_26 = arith.constant dense<0.000000e+00> : vector<8x8x8xf32>
    %50 = tpu.matmul %49, %38, %cst_26 {dimension_numbers = #tpu.dot_dimension_numbers<[2], [1], [1], [2], [0, 0, 0, 1, 1, 2], [0], [0]>} : vector<8x8x8xf32>, vector<8x8x8xf32>, vector<8x8x8xf32> -> vector<8x8x8xf32>
    "tpu.trace_stop"() : () -> ()
    %51 = vector.shape_cast %50 : vector<8x8x8xf32> to vector<2x4x8x8xf32>
    %52 = tpu.transpose %51, [0, 2, 1, 3] : vector<2x4x8x8xf32> -> vector<2x8x4x8xf32>
    %53 = vector.shape_cast %52 : vector<2x8x4x8xf32> to vector<16x32xf32>
    %c0_27 = arith.constant 0 : index
    %c0_28 = arith.constant 0 : index
    %c0_29 = arith.constant 0 : index
    %54 = vector.load %arg5[%c0_27, %c0_28, %c0_29] : memref<1x32x32xf32, #tpu.memory_space<vmem>>, vector<1x32x32xf32>
    %55 = vector.shape_cast %54 : vector<1x32x32xf32> to vector<32x32xf32>
    %cst_30 = arith.constant dense<0.000000e+00> : vector<16x32xf32>
    %56 = tpu.matmul %53, %55, %cst_30 {dimension_numbers = #tpu.dot_dimension_numbers<[1], [0], [0], [1], [0, 0, 1, 1], [], []>} : vector<16x32xf32>, vector<32x32xf32>, vector<16x32xf32> -> vector<16x32xf32>
    %57 = vector.broadcast %8 : vector<1x32xf32> to vector<16x32xf32>
    %58 = arith.addf %56, %57 : vector<16x32xf32>
    %59 = arith.addf %19, %58 : vector<16x32xf32>
    %cst_31 = arith.constant dense<0.000000e+00> : vector<16xf32>
    %60 = vector.multi_reduction <add>, %59, %cst_31 [1] : vector<16x32xf32> to vector<16xf32>
    %61 = vector.shape_cast %60 : vector<16xf32> to vector<16x1xf32>
    %cst_32 = arith.constant 3.200000e+01 : f32
    %62 = vector.broadcast %cst_32 : f32 to vector<16x1xf32>
    %63 = arith.divf %61, %62 : vector<16x1xf32>
    %64 = vector.broadcast %63 : vector<16x1xf32> to vector<16x32xf32>
    %65 = arith.subf %59, %64 : vector<16x32xf32>
    %66 = arith.mulf %65, %65 : vector<16x32xf32>
    %cst_33 = arith.constant dense<0.000000e+00> : vector<16xf32>
    %67 = vector.multi_reduction <add>, %66, %cst_33 [1] : vector<16x32xf32> to vector<16xf32>
    %68 = vector.shape_cast %67 : vector<16xf32> to vector<16x1xf32>
    %cst_34 = arith.constant 3.200000e+01 : f32
    %69 = vector.broadcast %cst_34 : f32 to vector<16x1xf32>
    %70 = arith.divf %68, %69 : vector<16x1xf32>
    %cst_35 = arith.constant 9.99999974E-6 : f32
    %71 = vector.broadcast %cst_35 : f32 to vector<16x1xf32>
    %72 = arith.addf %70, %71 : vector<16x1xf32>
    %73 = math.rsqrt %72 : vector<16x1xf32>
    %74 = vector.broadcast %73 : vector<16x1xf32> to vector<16x32xf32>
    %75 = arith.mulf %65, %74 : vector<16x32xf32>
    %76 = vector.broadcast %10 : vector<1x32xf32> to vector<16x32xf32>
    %77 = arith.mulf %75, %76 : vector<16x32xf32>
    %78 = vector.broadcast %12 : vector<1x32xf32> to vector<16x32xf32>
    %79 = arith.addf %77, %78 : vector<16x32xf32>
    %80 = arith.truncf %79 : vector<16x32xf32> to vector<16x32xbf16>
    %c0_36 = arith.constant 0 : index
    %c0_37 = arith.constant 0 : index
    %c0_38 = arith.constant 0 : index
    %81 = vector.load %arg6[%c0_36, %c0_37, %c0_38] : memref<1x32x2048xbf16, #tpu.memory_space<vmem>>, vector<1x32x2048xbf16>
    %82 = vector.shape_cast %81 : vector<1x32x2048xbf16> to vector<32x2048xbf16>
    %cst_39 = arith.constant dense<0.000000e+00> : vector<16x2048xf32>
    %83 = tpu.matmul %80, %82, %cst_39 {dimension_numbers = #tpu.dot_dimension_numbers<[1], [0], [0], [1], [0, 0, 1, 1], [], []>} : vector<16x32xbf16>, vector<32x2048xbf16>, vector<16x2048xf32> -> vector<16x2048xf32>
    %84 = vector.broadcast %4 : vector<1x2048xf32> to vector<16x2048xf32>
    %85 = arith.addf %83, %84 : vector<16x2048xf32>
    %cst_40 = arith.constant 0.000000e+00 : f32
    %86 = vector.broadcast %cst_40 : f32 to vector<16x2048xf32>
    %87 = arith.maximumf %85, %86 : vector<16x2048xf32>
    %88 = arith.truncf %87 : vector<16x2048xf32> to vector<16x2048xbf16>
    %c0_41 = arith.constant 0 : index
    %c0_42 = arith.constant 0 : index
    %c0_43 = arith.constant 0 : index
    %89 = vector.load %arg7[%c0_41, %c0_42, %c0_43] : memref<1x2048x32xbf16, #tpu.memory_space<vmem>>, vector<1x2048x32xbf16>
    %90 = vector.shape_cast %89 : vector<1x2048x32xbf16> to vector<2048x32xbf16>
    %cst_44 = arith.constant dense<0.000000e+00> : vector<16x32xf32>
    %91 = tpu.matmul %88, %90, %cst_44 {dimension_numbers = #tpu.dot_dimension_numbers<[1], [0], [0], [1], [0, 0, 1, 1], [], []>} : vector<16x2048xbf16>, vector<2048x32xbf16>, vector<16x32xf32> -> vector<16x32xf32>
    %92 = vector.broadcast %14 : vector<1x32xf32> to vector<16x32xf32>
    %93 = arith.addf %91, %92 : vector<16x32xf32>
    %94 = arith.addf %79, %93 : vector<16x32xf32>
    %cst_45 = arith.constant dense<0.000000e+00> : vector<16xf32>
    %95 = vector.multi_reduction <add>, %94, %cst_45 [1] : vector<16x32xf32> to vector<16xf32>
    %96 = vector.shape_cast %95 : vector<16xf32> to vector<16x1xf32>
    %cst_46 = arith.constant 3.200000e+01 : f32
    %97 = vector.broadcast %cst_46 : f32 to vector<16x1xf32>
    %98 = arith.divf %96, %97 : vector<16x1xf32>
    %99 = vector.broadcast %98 : vector<16x1xf32> to vector<16x32xf32>
    %100 = arith.subf %94, %99 : vector<16x32xf32>
    %101 = arith.mulf %100, %100 : vector<16x32xf32>
    %cst_47 = arith.constant dense<0.000000e+00> : vector<16xf32>
    %102 = vector.multi_reduction <add>, %101, %cst_47 [1] : vector<16x32xf32> to vector<16xf32>
    %103 = vector.shape_cast %102 : vector<16xf32> to vector<16x1xf32>
    %cst_48 = arith.constant 3.200000e+01 : f32
    %104 = vector.broadcast %cst_48 : f32 to vector<16x1xf32>
    %105 = arith.divf %103, %104 : vector<16x1xf32>
    %cst_49 = arith.constant 9.99999974E-6 : f32
    %106 = vector.broadcast %cst_49 : f32 to vector<16x1xf32>
    %107 = arith.addf %105, %106 : vector<16x1xf32>
    %108 = math.rsqrt %107 : vector<16x1xf32>
    %109 = vector.broadcast %108 : vector<16x1xf32> to vector<16x32xf32>
    %110 = arith.mulf %100, %109 : vector<16x32xf32>
    %111 = vector.broadcast %16 : vector<1x32xf32> to vector<16x32xf32>
    %112 = arith.mulf %110, %111 : vector<16x32xf32>
    %113 = vector.broadcast %18 : vector<1x32xf32> to vector<16x32xf32>
    %114 = arith.addf %112, %113 : vector<16x32xf32>
    %c0_50 = arith.constant 0 : index
    %c0_51 = arith.constant 0 : index
    %115 = vector.load %arg12[%c0_50, %c0_51] : memref<16x32xf32, #tpu.memory_space<vmem>>, vector<16x32xf32>
    tpu.vector_store %arg12[%c0_50, %c0_51], %114 {strides = array<i32>} : memref<16x32xf32, #tpu.memory_space<vmem>>, vector<16x32xf32>,
    %c1_i32 = arith.constant 1 : i32
    %116 = arith.cmpi eq, %arg0, %c1_i32 : i32
    %117 = arith.extui %116 : i1 to i32
    %c0_i32_52 = arith.constant 0 : i32
    %118 = arith.cmpi ne, %117, %c0_i32_52 : i32
    scf.if %118 {
      %119 = vector.extract_strided_slice %114 {offsets = [7, 0], sizes = [1, 32], strides = [1, 1]} : vector<16x32xf32> to vector<1x32xf32>
      %120 = vector.extract_strided_slice %114 {offsets = [15, 0], sizes = [1, 32], strides = [1, 1]} : vector<16x32xf32> to vector<1x32xf32>
      %121 = tpu.concatenate %119, %120 in 0 : vector<1x32xf32>, vector<1x32xf32> -> vector<2x32xf32>
      %c0_53 = arith.constant 0 : index
      %c0_54 = arith.constant 0 : index
      %122 = vector.load %arg9[%c0_53, %c0_54] : memref<32x3xf32, #tpu.memory_space<vmem>>, vector<32x3xf32>
      %cst_55 = arith.constant dense<0.000000e+00> : vector<2x3xf32>
      %123 = tpu.matmul %121, %122, %cst_55 {dimension_numbers = #tpu.dot_dimension_numbers<[1], [0], [0], [1], [0, 0, 1, 1], [], []>} : vector<2x32xf32>, vector<32x3xf32>, vector<2x3xf32> -> vector<2x3xf32>
      %c0_56 = arith.constant 0 : index
      %c0_57 = arith.constant 0 : index
      %124 = vector.load %arg10[%c0_56, %c0_57] : memref<1x3xf32, #tpu.memory_space<vmem>>, vector<1x3xf32>
      %125 = vector.broadcast %124 : vector<1x3xf32> to vector<2x3xf32>
      %126 = arith.addf %123, %125 : vector<2x3xf32>
      %c0_58 = arith.constant 0 : index
      %c0_59 = arith.constant 0 : index
      %127 = vector.load %arg11[%c0_58, %c0_59] : memref<2x3xf32, #tpu.memory_space<vmem>>, vector<2x3xf32>
      tpu.vector_store %arg11[%c0_58, %c0_59], %126 {strides = array<i32>} : memref<2x3xf32, #tpu.memory_space<vmem>>, vector<2x3xf32>,
    } else {
    }
    return
  }
  func.func @transform_0(%arg0: i32) -> (i32, i32) {
    %c0_i32 = arith.constant 0 : i32
    %c0_i32_0 = arith.constant 0 : i32
    %c0_i32_1 = arith.constant 0 : i32
    return %c0_i32, %c0_i32_0 : i32, i32
  }
  func.func @transform_1(%arg0: i32) -> (i32, i32) {
    %c0_i32 = arith.constant 0 : i32
    %c0_i32_0 = arith.constant 0 : i32
    %c0_i32_1 = arith.constant 0 : i32
    return %c0_i32, %c0_i32_0 : i32, i32
  }
  func.func @transform_2(%arg0: i32) -> (i32, i32) {
    %c0_i32 = arith.constant 0 : i32
    %c0_i32_0 = arith.constant 0 : i32
    %c0_i32_1 = arith.constant 0 : i32
    return %c0_i32, %c0_i32_0 : i32, i32
  }
  func.func @transform_3(%arg0: i32) -> (i32, i32, i32) {
    %c0_i32 = arith.constant 0 : i32
    %c0_i32_0 = arith.constant 0 : i32
    %c0_i32_1 = arith.constant 0 : i32
    return %arg0, %c0_i32, %c0_i32_0 : i32, i32, i32
  }
  func.func @transform_4(%arg0: i32) -> (i32, i32, i32) {
    %c0_i32 = arith.constant 0 : i32
    %c0_i32_0 = arith.constant 0 : i32
    %c0_i32_1 = arith.constant 0 : i32
    return %arg0, %c0_i32, %c0_i32_0 : i32, i32, i32
  }
  func.func @transform_5(%arg0: i32) -> (i32, i32, i32) {
    %c0_i32 = arith.constant 0 : i32
    %c0_i32_0 = arith.constant 0 : i32
    %c0_i32_1 = arith.constant 0 : i32
    return %arg0, %c0_i32, %c0_i32_0 : i32, i32, i32
  }
  func.func @transform_6(%arg0: i32) -> (i32, i32, i32) {
    %c0_i32 = arith.constant 0 : i32
    %c0_i32_0 = arith.constant 0 : i32
    %c0_i32_1 = arith.constant 0 : i32
    return %arg0, %c0_i32, %c0_i32_0 : i32, i32, i32
  }
  func.func @transform_7(%arg0: i32) -> (i32, i32, i32) {
    %c0_i32 = arith.constant 0 : i32
    %c0_i32_0 = arith.constant 0 : i32
    %c0_i32_1 = arith.constant 0 : i32
    return %arg0, %c0_i32, %c0_i32_0 : i32, i32, i32
  }
  func.func @transform_8(%arg0: i32) -> (i32, i32) {
    %c0_i32 = arith.constant 0 : i32
    %c0_i32_0 = arith.constant 0 : i32
    %c0_i32_1 = arith.constant 0 : i32
    return %c0_i32, %c0_i32_0 : i32, i32
  }
  func.func @transform_9(%arg0: i32) -> (i32, i32) {
    %c0_i32 = arith.constant 0 : i32
    %c0_i32_0 = arith.constant 0 : i32
    %c0_i32_1 = arith.constant 0 : i32
    return %c0_i32, %c0_i32_0 : i32, i32
  }
  func.func @transform_10(%arg0: i32) -> (i32, i32) {
    %c0_i32 = arith.constant 0 : i32
    %c0_i32_0 = arith.constant 0 : i32
    %c0_i32_1 = arith.constant 0 : i32
    return %c0_i32, %c0_i32_0 : i32, i32
  }
}

</mosaic_0001>

<bundles_post_ra>
// kernel: transformer_forward.1
= control target key start
LH: loop header
LB: loop body
LE: loop exit
PB: predicated region body
PF: predicated region fallthrough
CT: control target
= control target key end

     0   :  { %15 = vsyncpa [#allocation4], 0  ;;  %s6395_s13 = smov 0   ;;  %s7174_s0 = inlined_call_operand.vmem [shape: f32[16,16], index: 0, kind: input, shape index: {}]   ;;  %s7175_s1 = inlined_call_operand.vmem [shape: f32[16,32], index: 1, kind: input, shape index: {}]   ;;  %s7176_s2 = inlined_call_operand.vmem [shape: f32[16,32], index: 2, kind: input, shape index: {}]   ;;  %s7177_s3 = inlined_call_operand.vmem [shape: f32[2,32,96], index: 3, kind: input, shape index: {}]   ;;  %s7178_s4 = inlined_call_operand.vmem [shape: f32[2,32,32], index: 4, kind: input, shape index: {}]   ;;  %s7179_s5 = inlined_call_operand.vmem [shape: bf16[2,32,2048], index: 5, kind: input, shape index: {}]   ;;  %s7180_s6 = inlined_call_operand.vmem [shape: bf16[2,2048,32], index: 6, kind: input, shape index: {}]   ;;  %s7181_s7 = inlined_call_operand.vmem [shape: f32[2,1,2336], index: 7, kind: input, shape index: {}]   ;;  %s7182_s8 = inlined_call_operand.vmem [shape: f32[32,3], index: 8, kind: input, shape index: {}]   ;;  %s7183_s9 = inlined_call_operand.vmem [shape: f32[1,3], index: 9, kind: input, shape index: {}]   ;;  %s7184_s10 = inlined_call_operand.hbm [shape: f32[2,3], index: 10, kind: output, shape index: {}]  }
   0x1 LB: > { %s6401_s14 = sadd.s32 4294967295, %s6321_s13   ;;  %p5496_p0 = scmp.ge.s32.totalorder %s6321_s13, 1  ;;  %s6321_s13 = sphi %s6395_s13, %s21_s13  }
   0x2   : > { %p347_p1 = scmp.lt.s32.totalorder %s6321_s13, 3 }
   0x4   : > { %p348_p2 = pnand %p5496_p0, %p347_p1 }
   0x5   : > { %p399_p3 = scmp.lt.s32.totalorder (!%p348_p2), %s6401_s14, 1  ;;  %p5505_p4 = scmp.ne.s32.totalorder (!%p348_p2), %s6401_s14, 0 }
   0x6   : > { %351 = sbr.rel (%p348_p2) target bundleno = 3120 (0xc30), region = 60 }
   0xb   : > { %s400_s15 = scalar_select %p399_p3, %s6401_s14, 1 }
   0xd   : > { %s5730_s16 = sshll.u32 %s400_s15, 5  ;;  %s5732_s17 = sshll.u32 %s400_s15, 8 }
   0xe   : > { %s6410_s20 = scalar_lea.vmem %s7177_s3, %s5730_s16  ;;  %s6415_s23 = scalar_lea.vmem %s7178_s4, %s5730_s16 }
   0xf   : > { %s6420_s26 = scalar_lea.vmem %s7179_s5, %s5732_s17  ;;  %s5733_s27 = sshll.u32 %s400_s15, 10 }
  0x10   : > { %s6425_s30 = scalar_lea.vmem %s7180_s6, %s5733_s27  ;;  %s6083_s11 = smul.u32 19, %s400_s15 }
  0x11   : > { %427 = sbr.rel (%p5505_p4) target bundleno = 225 (0xe1), region = 64 }
  0x12   : > { %s6430_s19 = scalar_lea.vmem %s7181_s7, %s6083_s11 }
  0x16   : > { %v431_v0 = vld [vmem:[%s7176_s2 + $0x8] sm:$0xff]  ;;  %v430_v1 = vld [vmem:[%s7176_s2] sm:$0xff]  ;;  %vm434_vm0 = vcmask 130048   ;;  %vm516_vm1 = vcmask 261120  }
  0x17   : > { %v428_v2 = vld [vmem:[%s7174_s0] sm:$0xff]  ;;  %5963 = vmatprep.subr.mxu0 %v431_v0  ;;  %v429_v3 = vld [vmem:[%s7174_s0 + $0x8] sm:$0xff] }
  0x18   : > { %5967 = vmatprep.mubr.msk.f32.mxu0 %vm434_vm0, %v428_v2  ;;  %5964 = vmatpush3.msra.mxu0 %v431_v0  ;;  %v433_v4 = vld [vmem:[%s7175_s1 + $0x8] sm:$0xff]  ;;  %v432_v6 = vld [vmem:[%s7175_s1] sm:$0xff] }
  0x19   : > { %5965 = vmatprep.subr.mxu0 %v430_v1 }
  0x1a   : > { %5966 = vmatpush3.msra.mxu0 %v430_v1 }
  0x1b   : > { %5968 = vmatmul.mubr.msk.f32.vlgmr.msra.gmra.mxu0 %vm434_vm0, %v429_v3 }
  0xdb   : > { %v5969_v5 = vpop.f32.mrf.mxu0 }
  0xdc   : > { %v513_v7 = vadd.f32 %v5969_v5, %v433_v4 }
  0xdd   : > { %v507_v8 = vpop.f32.mrf.mxu0 }
  0xde   : > { %518 = vst.msk [vmem:[#allocation2 + $0x8] sm:$0xff] %vm516_vm1, %v513_v7  ;;  %v508_v9 = vadd.f32 %v507_v8, %v432_v6 }
  0xe0   : > { %517 = vst.msk [vmem:[#allocation2] sm:$0xff] %vm516_vm1, %v508_v9 }
  0xe1 PF: > { %v529_v10 = vld [vmem:[%s6410_s20 + $0x18] sm:$0xff]  ;;  %v528_v11 = vld [vmem:[%s6410_s20 + $0x10] sm:$0xff]  ;;  %vm536_vm2 = vcmask 261120   ;;  %v527_v12 = vld [vmem:[%s6410_s20 + $0x8] sm:$0xff]  ;;  %s6323_s18 = smov 104   ;;  %s6324_s16 = smov 120   ;;  %v645_v33 = vlaneseq }
  0xe2   : > { %5970 = vmatprep.subr.mxu0 %v529_v10  ;;  %v526_v14 = vld [vmem:[%s6410_s20] sm:$0xff]  ;;  %v5508_v17 = vld [vmem:[%s6430_s19 + $0x10] ss:$0 sm:$0xff]  ;;  %s6325_s20 = smov 112   ;;  %s6326_s21 = smov 96   ;;  %v6327_v26 = vmov 0.0  }
  0xe3   : > { %5971 = vmatpush3.msra.mxu0 %v529_v10  ;;  %5981 = vmatprep.subr.mxu1 %v6327_v26  ;;  %vm6328_vm3 = vmmov 0   ;;  %s6329_s17 = smov 64   ;;  %v6330_v31 = vmov 1983009808   ;;  %v6331_v34 = vmov 1934713408  }
  0xe4   : > { %5972 = vmatprep.subr.mxu0 %v528_v11  ;;  %5983 = vmatprep.mubr.msk.f32.mxu1 %vm6328_vm3, %v6327_v26  ;;  %v643_v32 = vunpack.c.l.s4 %v6330_v31  ;;  %v675_v35 = vunpack.c.l.s4 %v6331_v34  ;;  %v6514_v37 = vshrl.u32 %v645_v33, 7  ;;  %vm1518_vm4 = vcmask 64512   ;;  %s6332_s22 = smov 8   ;;  %s6333_s24 = smov 16  }
  0xe5   : > { %5973 = vmatpush3.msra.mxu0 %v528_v11  ;;  %v525_v15 = vld [vmem:[#allocation2 + $0x8] sm:$0xff]  ;;  %s6334_s25 = smov 24   ;;  %vm3097_vm5 = vcmask 130048   ;;  %vm3100_vm6 = vcmask 195584   ;;  %p5723_p5 = scmp.ne.s32.totalorder %s6401_s14, 1 }
  0xe6   : > { %5974 = vmatprep.subr.mxu0 %v527_v12  ;;  %v644_v36 = vunpack.c.0.s8 %v643_v32  ;;  %v676_v40 = vunpack.c.0.s8 %v675_v35 }
  0xe7   : > { %v524_v13 = vld [vmem:[#allocation2] sm:$0xff]  ;;  %5975 = vmatpush3.msra.mxu0 %v527_v12 }
  0xe8   : > { %5978 = vmatprep.mubr.msk.f32.mxu0 %vm536_vm2, %v524_v13  ;;  %5976 = vmatprep.subr.mxu0 %v526_v14  ;;  %v6517_v41 = vsub.s32 %v644_v36, %v6514_v37  ;;  %v6520_v48 = vsub.s32 %v676_v40, %v6514_v37 }
  0xe9   : > { %5977 = vmatpush3.msra.mxu0 %v526_v14 }
  0xea   : > { %5979 = vmatmul.mubr.msk.f32.vlgmr.msra.gmra.mxu0 %vm536_vm2, %v525_v15  ;;  %6001 = vmatprep.subr.mxu0 %v6327_v26 }
  0xeb   : > { %6003 = vmatprep.mubr.msk.f32.mxu0 %vm6328_vm3, %v6327_v26 }
 0x1aa   : > { %v5980_v16 = vpop.f32.mrf.mxu0 }
 0x1ab   : > { %v6460_v20 = vadd.f32 %v5980_v16, %v5508_v17 }
 0x1ac   : > { %v609_v18 = vpop.f32.mrf.mxu0 }
 0x1ad   : > { %v610_v19 = vadd.f32 %v5508_v17, %v609_v18  ;;  %v6501_v29 = vmul.f32 0.35355338, %v6460_v20 }
 0x1af   : > { %922 = vrot.lane.b32.xlu1 %v610_v19, %s6323_s18  ;;  %914 = vrot.lane.b32.xlu0 %v610_v19, %s6324_s16  ;;  %v6468_v21 = vmul.f32 0.35355338, %v610_v19 }
 0x1b3   : > { %916 = vrot.lane.b32.xlu1 %v6460_v20, %s6324_s16  ;;  %918 = vrot.lane.b32.xlu0 %v610_v19, %s6325_s20 }
 0x1b7   : > { %924 = vrot.lane.b32.xlu1 %v6460_v20, %s6323_s18  ;;  %920 = vrot.lane.b32.xlu0 %v6460_v20, %s6325_s20 }
 0x1bb   : > { %926 = vrot.lane.b32.xlu0 %v610_v19, %s6326_s21 }
 0x1bf   : > { %622 = vrot.lane.b32.xlu0 %v6468_v21, %s6324_s16 }
 0x221   : > { %v915_v22 = vpop.permute.xlu0 %914  ;;  %v6473_v23 = vpop.permute.xlu1 %922 }
 0x222   : > { %930 = vrot.lane.b32.xlu1 %v915_v22, %s6326_s21 }
 0x225   : > { %v6475_v24 = vpop.permute.xlu0 %918  ;;  %v6484_v25 = vpop.permute.xlu1 %916 }
 0x226   : > { %938 = vrot.lane.b32.xlu1 %v6473_v23, %s6326_s21  ;;  %934 = vrot.lane.b32.xlu0 %v6475_v24, %s6326_s21 }
 0x229   : > { %v6492_v27 = vpop.permute.xlu1 %924  ;;  %v6494_v28 = vpop.permute.xlu0 %920 }
 0x22a   : > { %628 = vrot.lane.b32.xlu1 %v6468_v21, %s6325_s20  ;;  %634 = vrot.lane.b32.xlu0 %v6468_v21, %s6323_s18 }
 0x22d   : > { %v927_v30 = vpop.permute.xlu0 %926 }
 0x22e   : > { %928 = vrot.lane.b32.xlu1 %v6460_v20, %s6326_s21  ;;  %932 = vrot.lane.b32.xlu0 %v6484_v25, %s6326_s21 }
 0x231   : > { %v623_v38 = vpop.permute.xlu0 %622 }
 0x232   : > { %936 = vrot.lane.b32.xlu1 %v6494_v28, %s6326_s21  ;;  %940 = vrot.lane.b32.xlu0 %v6492_v27, %s6326_s21 }
 0x236   : > { %624 = vrot.lane.b32.xlu1 %v6501_v29, %s6324_s16  ;;  %630 = vrot.lane.b32.xlu0 %v6501_v29, %s6325_s20 }
 0x23a   : > { %636 = vrot.lane.b32.xlu1 %v6501_v29, %s6323_s18  ;;  %1226 = vrot.lane.b32.xlu0 %v915_v22, %s6329_s17 }
 0x23e   : > { %1222 = vrot.lane.b32.xlu1 %v610_v19, %s6329_s17 }
 0x294   : > { %v931_v39 = vpop.permute.xlu1 %930 }
 0x298   : > { %v939_v42 = vpop.permute.xlu1 %938  ;;  %v935_v43 = vpop.permute.xlu0 %934 }
 0x299   : > { %v966_v44 = vcombine.low %v931_v39, %v939_v42  ;;  %v967_v45 = vcombine.high %v931_v39, %v939_v42  ;;  %v950_v46 = vcombine.low %v927_v30, %v935_v43  ;;  %v951_v47 = vcombine.high %v927_v30, %v935_v43 }
 0x29b   : > { %v974_v49 = vrot.slane %v966_v44, %v6517_v41  ;;  %v981_v50 = vrot.slane %v967_v45, %v6517_v41  ;;  %v958_v51 = vrot.slane %v950_v46, %v6517_v41  ;;  %v965_v52 = vrot.slane %v951_v47, %v6517_v41 }
 0x29c   : > { %v629_v53 = vpop.permute.xlu1 %628  ;;  %v635_v54 = vpop.permute.xlu0 %634 }
 0x29d   : > { %v982_v55 = vcombine.low %v958_v51, %v974_v49  ;;  %v983_v56 = vcombine.high %v958_v51, %v974_v49  ;;  %v998_v57 = vcombine.low %v965_v52, %v981_v50  ;;  %v999_v58 = vcombine.high %v965_v52, %v981_v50 }
 0x29e   : > { %v640_v59 = vcombine.low %v6468_v21, %v629_v53  ;;  %v641_v60 = vcombine.high %v6468_v21, %v629_v53  ;;  %v656_v61 = vcombine.low %v623_v38, %v635_v54  ;;  %v657_v62 = vcombine.high %v623_v38, %v635_v54 }
 0x29f   : > { %v990_v63 = vrot.slane %v982_v55, %v6520_v48  ;;  %v997_v0 = vrot.slane %v983_v56, %v6520_v48  ;;  %v1006_v1 = vrot.slane %v998_v57, %v6520_v48  ;;  %v1013_v2 = vrot.slane %v999_v58, %v6520_v48 }
 0x2a0   : > { %v648_v3 = vrot.slane %v640_v59, %v6517_v41  ;;  %v655_v4 = vrot.slane %v641_v60, %v6517_v41  ;;  %v664_v5 = vrot.slane %v656_v61, %v6517_v41  ;;  %v671_v6 = vrot.slane %v657_v62, %v6517_v41  ;;  %v929_v7 = vpop.permute.xlu1 %928  ;;  %v933_v8 = vpop.permute.xlu0 %932 }
 0x2a1   : > { %v1086_v9 = vcombine.low %v990_v63, %v997_v0  ;;  %v5515_v14 = vcombine.high %v990_v63, %v997_v0  ;;  %v1102_v15 = vcombine.low %v1006_v1, %v1013_v2  ;;  %v5516_v32 = vcombine.high %v1006_v1, %v1013_v2 }
 0x2a2   : > { %v672_v10 = vcombine.low %v648_v3, %v664_v5  ;;  %v673_v11 = vcombine.high %v648_v3, %v664_v5  ;;  %v688_v12 = vcombine.low %v655_v4, %v671_v6  ;;  %v689_v13 = vcombine.high %v655_v4, %v671_v6 }
 0x2a3   : > { %v6541_v35 = vrot.slane %v1086_v9, %v6517_v41  ;;  %v6548_v46 = vrot.slane %v5515_v14, %v6517_v41  ;;  %v6551_v47 = vrot.slane %v1102_v15, %v6517_v41  ;;  %v1117_v56 = vrot.slane %v5516_v32, %v6517_v41 }
 0x2a4   : > { %v680_v16 = vrot.slane %v672_v10, %v6520_v48  ;;  %v687_v17 = vrot.slane %v673_v11, %v6520_v48  ;;  %v937_v18 = vpop.permute.xlu1 %936  ;;  %v941_v19 = vpop.permute.xlu0 %940  ;;  %v696_v33 = vrot.slane %v688_v12, %v6520_v48  ;;  %v703_v34 = vrot.slane %v689_v13, %v6520_v48 }
 0x2a5   : > { %v1018_v21 = vcombine.low %v929_v7, %v937_v18  ;;  %v1019_v22 = vcombine.high %v929_v7, %v937_v18  ;;  %v1034_v30 = vcombine.low %v933_v8, %v941_v19  ;;  %v1035_v31 = vcombine.high %v933_v8, %v941_v19 }
 0x2a6   : > { %v776_v42 = vcombine.low %v680_v16, %v687_v17  ;;  %v5511_v43 = vcombine.high %v680_v16, %v687_v17  ;;  %v792_v53 = vcombine.low %v696_v33, %v703_v34  ;;  %v5512_v54 = vcombine.high %v696_v33, %v703_v34 }
 0x2a7   : > { %v1026_v36 = vrot.slane %v1018_v21, %v6517_v41  ;;  %v1033_v38 = vrot.slane %v1019_v22, %v6517_v41  ;;  %v1042_v39 = vrot.slane %v1034_v30, %v6517_v41  ;;  %v1049_v40 = vrot.slane %v1035_v31, %v6517_v41 }
 0x2a8   : > { %v625_v44 = vpop.permute.xlu1 %624  ;;  %v631_v45 = vpop.permute.xlu0 %630  ;;  %v6560_v61 = vrot.slane %v776_v42, %v6517_v41  ;;  %v6563_v62 = vrot.slane %v5511_v43, %v6517_v41  ;;  %v1118_v0 = vcombine.low %v6541_v35, %v6548_v46  ;;  %v799_v6 = vrot.slane %v792_v53, %v6517_v41 }
 0x2a9   : > { %v1050_v49 = vcombine.low %v1026_v36, %v1042_v39  ;;  %v1051_v50 = vcombine.high %v1026_v36, %v1042_v39  ;;  %v1066_v51 = vcombine.low %v1033_v38, %v1049_v40  ;;  %v1067_v52 = vcombine.high %v1033_v38, %v1049_v40 }
 0x2aa   : > { %v708_v55 = vcombine.low %v6501_v29, %v631_v45  ;;  %v709_v63 = vcombine.high %v6501_v29, %v631_v45  ;;  %v1126_v7 = vrot.slane %v1118_v0, %v6520_v48  ;;  %v1134_v8 = vcombine.low %v6551_v47, %v1117_v56 }
 0x2ab   : > { %v1058_v57 = vrot.slane %v1050_v49, %v6520_v48  ;;  %v1065_v58 = vrot.slane %v1051_v50, %v6520_v48  ;;  %v1074_v59 = vrot.slane %v1066_v51, %v6520_v48  ;;  %v1081_v60 = vrot.slane %v1067_v52, %v6520_v48 }
 0x2ac   : > { %v637_v1 = vpop.permute.xlu1 %636  ;;  %v807_v10 = vrot.slane %v5512_v54, %v6517_v41  ;;  %v716_v12 = vrot.slane %v708_v55, %v6517_v41  ;;  %v1142_v13 = vrot.slane %v1134_v8, %v6520_v48  ;;  %v808_v16 = vcombine.low %v6560_v61, %v6563_v62 }
 0x2ad   : > { %v1154_v2 = vcombine.low %v1058_v57, %v1065_v58  ;;  %v5517_v3 = vcombine.high %v1058_v57, %v1065_v58  ;;  %v1170_v4 = vcombine.low %v1074_v59, %v1081_v60  ;;  %v5518_v5 = vcombine.high %v1074_v59, %v1081_v60 }
 0x2ae   : > { %v724_v9 = vcombine.low %v625_v44, %v637_v1  ;;  %v725_v14 = vcombine.high %v625_v44, %v637_v1  ;;  %v809_v17 = vcombine.high %v6560_v61, %v6563_v62  ;;  %v723_v21 = vrot.slane %v709_v63, %v6517_v41 }
 0x2af   : > { %v6573_v11 = vrot.slane %v1154_v2, %v6517_v41  ;;  %v6576_v29 = vrot.slane %v5517_v3, %v6517_v41  ;;  %v1177_v18 = vrot.slane %v1170_v4, %v6517_v41  ;;  %v1185_v19 = vrot.slane %v5518_v5, %v6517_v41 }
 0x2b0   : > { %v732_v15 = vrot.slane %v724_v9, %v6517_v41  ;;  %v1119_v22 = vcombine.high %v6541_v35, %v6548_v46  ;;  %v1150_v30 = vcombine.low %v1126_v7, %v1142_v13  ;;  %v739_v31 = vrot.slane %v725_v14, %v6517_v41 }
 0x2b1   : > { %v1135_v33 = vcombine.high %v6551_v47, %v1117_v56  ;;  %v816_v36 = vrot.slane %v808_v16, %v6520_v48  ;;  %v824_v38 = vcombine.low %v799_v6, %v807_v10  ;;  %v1186_v39 = vcombine.low %v6573_v11, %v6576_v29 }
 0x2b2   : > { %v740_v32 = vcombine.low %v716_v12, %v732_v15  ;;  %v741_v34 = vcombine.high %v716_v12, %v732_v15  ;;  %5982 = vmatpush3.xpose.msk.msra.mxu1 %vm1518_vm4, %v1150_v30  ;;  %v756_v42 = vcombine.low %v723_v21, %v739_v31  ;;  %v757_v43 = vcombine.high %v723_v21, %v739_v31 }
 0x2b3   : > { %v825_v35 = vcombine.high %v799_v6, %v807_v10  ;;  %v1202_v44 = vcombine.low %v1177_v18, %v1185_v19  ;;  %5986 = vmatprep.subr.mxu1 %v6327_v26  ;;  %v832_v46 = vrot.slane %v824_v38, %v6520_v48  ;;  %v1187_v47 = vcombine.high %v6573_v11, %v6576_v29 }
 0x2b4   : > { %v748_v40 = vrot.slane %v740_v32, %v6520_v48  ;;  %v755_v45 = vrot.slane %v741_v34, %v6520_v48  ;;  %v1151_v49 = vcombine.high %v1126_v7, %v1142_v13  ;;  %v764_v50 = vrot.slane %v756_v42, %v6520_v48 }
 0x2b5   : > { %v771_v51 = vrot.slane %v757_v43, %v6520_v48  ;;  %v840_v54 = vcombine.low %v816_v36, %v832_v46  ;;  %v1133_v55 = vrot.slane %v1119_v22, %v6520_v48  ;;  %v1149_v58 = vrot.slane %v1135_v33, %v6520_v48 }
 0x2b6   : > { %v844_v52 = vcombine.low %v748_v40, %v755_v45  ;;  %v5513_v53 = vcombine.high %v748_v40, %v755_v45  ;;  %v1194_v59 = vrot.slane %v1186_v39, %v6520_v48  ;;  %v1203_v60 = vcombine.high %v1177_v18, %v1185_v19 }
 0x2b7   : > { %v860_v56 = vcombine.low %v764_v50, %v771_v51  ;;  %v5514_v57 = vcombine.high %v764_v50, %v771_v51  ;;  %5984 = vmatmul.mubr.msk.f32.vlgmr.msra.gmra.mxu1 %vm1518_vm4, %v840_v54  ;;  %v1210_v63 = vrot.slane %v1202_v44, %v6520_v48  ;;  %v823_v2 = vrot.slane %v809_v17, %v6520_v48 }
 0x2b8   : > { %v851_v61 = vrot.slane %v844_v52, %v6517_v41  ;;  %v859_v62 = vrot.slane %v5513_v53, %v6517_v41  ;;  %5987 = vmatpush3.xpose.msk.msra.mxu1 %vm1518_vm4, %v1151_v49  ;;  %5988 = vmatprep.mubr.msk.f32.mxu1 %vm6328_vm3, %v6327_v26  ;;  %v841_v4 = vcombine.high %v816_v36, %v832_v46 }
 0x2b9   : > { %v867_v0 = vrot.slane %v860_v56, %v6517_v41  ;;  %v875_v1 = vrot.slane %v5514_v57, %v6517_v41  ;;  %5991 = vmatprep.subr.mxu1 %v6327_v26  ;;  %v839_v5 = vrot.slane %v825_v35, %v6520_v48  ;;  %v1218_v6 = vcombine.low %v1194_v59, %v1210_v63 }
 0x2ba   : > { %v876_v3 = vcombine.low %v851_v61, %v859_v62  ;;  %v1152_v8 = vcombine.low %v1133_v55, %v1149_v58  ;;  %v877_v9 = vcombine.high %v851_v61, %v859_v62  ;;  %v1201_v12 = vrot.slane %v1187_v47, %v6520_v48  ;;  %v1227_v61 = vpop.permute.xlu0 %1226 }
 0x2bb   : > { %v892_v7 = vcombine.low %v867_v0, %v875_v1  ;;  %v893_v10 = vcombine.high %v867_v0, %v875_v1  ;;  %5989 = vmatmul.mubr.msk.f32.vlgmr.msra.gmra.mxu1 %vm1518_vm4, %v841_v4  ;;  %6002 = vmatpush3.xpose.msk.msra.mxu0 %vm1518_vm4, %v1218_v6  ;;  %v1217_v13 = vrot.slane %v1203_v60, %v6520_v48 }
 0x2bc   : > { %v884_v11 = vrot.slane %v876_v3, %v6520_v48  ;;  %5992 = vmatpush3.xpose.msk.msra.mxu1 %vm1518_vm4, %v1152_v8  ;;  %5993 = vmatprep.mubr.msk.f32.mxu1 %vm6328_vm3, %v6327_v26  ;;  %v842_v14 = vcombine.low %v823_v2, %v839_v5  ;;  %v1153_v15 = vcombine.high %v1133_v55, %v1149_v58 }
 0x2bd   : > { %v900_v29 = vrot.slane %v892_v7, %v6520_v48  ;;  %5996 = vmatprep.subr.mxu1 %v6327_v26  ;;  %6011 = vmatprep.subr.mxu0 %v6327_v26  ;;  %v891_v17 = vrot.slane %v877_v9, %v6520_v48  ;;  %v907_v18 = vrot.slane %v893_v10, %v6520_v48 }
 0x2be   : > { %v1220_v19 = vcombine.low %v1201_v12, %v1217_v13  ;;  %v843_v21 = vcombine.high %v823_v2, %v839_v5  ;;  %v1219_v22 = vcombine.high %v1194_v59, %v1210_v63  ;;  %v1221_v32 = vcombine.high %v1201_v12, %v1217_v13  ;;  %v1223_v63 = vpop.permute.xlu1 %1222 }
 0x2bf   : > { %v908_v16 = vcombine.low %v884_v11, %v900_v29  ;;  %5994 = vmatmul.mubr.msk.f32.vlgmr.msra.gmra.mxu1 %vm1518_vm4, %v842_v14  ;;  %v909_v30 = vcombine.high %v884_v11, %v900_v29  ;;  %v910_v31 = vcombine.low %v891_v17, %v907_v18  ;;  %v911_v33 = vcombine.high %v891_v17, %v907_v18 }
 0x2c0   : > { %5997 = vmatpush3.xpose.msk.msra.mxu1 %vm1518_vm4, %v1153_v15  ;;  %5998 = vmatprep.mubr.msk.f32.mxu1 %vm6328_vm3, %v6327_v26 }
 0x2c1   : > { %6006 = vmatprep.subr.mxu1 %v6327_v26  ;;  %6004 = vmatmul.mubr.msk.f32.vlgmr.msra.gmra.mxu0 %vm1518_vm4, %v908_v16 }
 0x2c2   : > { %6012 = vmatpush3.xpose.msk.msra.mxu0 %vm1518_vm4, %v1220_v19  ;;  %6013 = vmatprep.mubr.msk.f32.mxu0 %vm6328_vm3, %v6327_v26 }
 0x2c3   : > { %5999 = vmatmul.mubr.msk.f32.vlgmr.msra.gmra.mxu1 %vm1518_vm4, %v843_v21  ;;  %6021 = vmatprep.subr.mxu0 %v6327_v26 }
 0x2c4   : > { %6007 = vmatpush3.xpose.msk.msra.mxu1 %vm1518_vm4, %v1219_v22  ;;  %6008 = vmatprep.mubr.msk.f32.mxu1 %vm6328_vm3, %v6327_v26 }
 0x2c5   : > { %6016 = vmatprep.subr.mxu1 %v6327_v26  ;;  %6014 = vmatmul.mubr.msk.f32.vlgmr.msra.gmra.mxu0 %vm1518_vm4, %v910_v31 }
 0x2c6   : > { %6023 = vmatprep.mubr.msk.f32.mxu0 %vm6328_vm3, %v6327_v26 }
 0x2c7   : > { %6009 = vmatmul.mubr.msk.f32.vlgmr.msra.gmra.mxu1 %vm1518_vm4, %v909_v30 }
 0x2c8   : > { %6017 = vmatpush3.xpose.msk.msra.mxu1 %vm1518_vm4, %v1221_v32  ;;  %6018 = vmatprep.mubr.msk.f32.mxu1 %vm6328_vm3, %v6327_v26 }
 0x2c9   : > { %6026 = vmatprep.subr.mxu1 %v6327_v26 }
 0x2cb   : > { %6019 = vmatmul.mubr.msk.f32.vlgmr.msra.gmra.mxu1 %vm1518_vm4, %v911_v33 }
 0x2cc   : > { %6028 = vmatprep.mubr.msk.f32.mxu1 %vm6328_vm3, %v6327_v26 }
 0x377   : > { %v1591_v34 = vpop.f32.mrf.mxu1 }
 0x378   : > { %v2127_v36 = vsel %vm1518_vm4, %v1591_v34, -inf }
 0x379   : > { %2128 = vmax.xlane.f32.xlu0 %v2127_v36  ;;  %v5985_v38 = vpop.f32.mrf.mxu1 }
 0x37b   : > { %v1667_v39 = vpop.f32.mrf.mxu1 }
 0x37c   : > { %v2130_v57 = vsel %vm1518_vm4, %v1667_v39, -inf }
 0x37d   : > { %v5990_v40 = vpop.f32.mrf.mxu1 }
 0x37f   : > { %v1743_v42 = vpop.f32.mrf.mxu1 }
 0x380   : > { %v2133_v43 = vsel %vm1518_vm4, %v1743_v42, -inf }
 0x381   : > { %2134 = vmax.xlane.f32.xlu0 %v2133_v43  ;;  %v5995_v35 = vpop.f32.mrf.mxu1  ;;  %v1895_v44 = vpop.f32.mrf.mxu0 }
 0x382   : > { %v2139_v45 = vsel %vm1518_vm4, %v1895_v44, -inf }
 0x383   : > { %v1819_v46 = vpop.f32.mrf.mxu1  ;;  %2140 = vmax.xlane.f32.xlu1 %v2139_v45  ;;  %v6005_v47 = vpop.f32.mrf.mxu0 }
 0x384   : > { %v2136_v49 = vsel %vm1518_vm4, %v1819_v46, -inf }
 0x385   : > { %2137 = vmax.xlane.f32.xlu0 %v2136_v49  ;;  %v6000_v50 = vpop.f32.mrf.mxu1  ;;  %v2047_v51 = vpop.f32.mrf.mxu0 }
 0x386   : > { %v2145_v52 = vsel %vm1518_vm4, %v2047_v51, -inf }
 0x387   : > { %v1971_v53 = vpop.f32.mrf.mxu1  ;;  %2146 = vmax.xlane.f32.xlu1 %v2145_v52  ;;  %v6015_v54 = vpop.f32.mrf.mxu0 }
 0x388   : > { %v2142_v55 = vsel %vm1518_vm4, %v1971_v53, -inf }
 0x389   : > { %2143 = vmax.xlane.f32.xlu0 %v2142_v55  ;;  %v6010_v56 = vpop.f32.mrf.mxu1 }
 0x38b   : > { %v2123_v58 = vpop.f32.mrf.mxu1  ;;  %2131 = vmax.xlane.f32.xlu1 %v2130_v57 }
 0x38c   : > { %v2148_v59 = vsel %vm1518_vm4, %v2123_v58, -inf }
 0x38d   : > { %2149 = vmax.xlane.f32.xlu0 %v2148_v59  ;;  %v6020_v60 = vpop.f32.mrf.mxu1 }
 0x39c   : > { %1230 = vrot.lane.b32.xlu1 %v6475_v24, %s6329_s17 }
 0x3a0   : > { %1234 = vrot.lane.b32.xlu1 %v6473_v23, %s6329_s17 }
 0x3a3   : > { %1224 = vrot.lane.b32.xlu0 %v6460_v20, %s6329_s17 }
 0x3a4   : > { %1228 = vrot.lane.b32.xlu1 %v6484_v25, %s6329_s17 }
 0x402   : > { %v2129_v62 = vpop.xlane.xlu0 %2128 }
 0x403   : > { %v2151_v0 = vsub.f32 %v1591_v34, %v2129_v62 }
 0x405   : > { %v2159_v4 = vmul.f32 1.442695, %v2151_v0 }
 0x40a   : > { %v2135_v1 = vpop.xlane.xlu0 %2134 }
 0x40b   : > { %v2153_v5 = vsub.f32 %v1743_v42, %v2135_v1 }
 0x40c   : > { %v2141_v2 = vpop.xlane.xlu1 %2140 }
 0x40d   : > { %v2155_v3 = vsub.f32 %v1895_v44, %v2141_v2  ;;  %v2163_v8 = vmul.f32 1.442695, %v2153_v5 }
 0x40e   : > { %v2138_v6 = vpop.xlane.xlu0 %2137 }
 0x40f   : > { %v2167_v24 = vmul.f32 1.442695, %v2155_v3  ;;  %v2154_v10 = vsub.f32 %v1819_v46, %v2138_v6 }
 0x410   : > { %v2147_v7 = vpop.xlane.xlu1 %2146 }
 0x411   : > { %6243 = vpow2.f32 %v2167_v24  ;;  %v2157_v23 = vsub.f32 %v2047_v51, %v2147_v7  ;;  %v2165_v14 = vmul.f32 1.442695, %v2154_v10 }
 0x412   : > { %6245 = vpow2.f32 %v2159_v4  ;;  %v2144_v20 = vpop.xlane.xlu0 %2143 }
 0x413   : > { %v2171_v9 = vmul.f32 1.442695, %v2157_v23  ;;  %v2156_v15 = vsub.f32 %v1971_v53, %v2144_v20 }
 0x414   : > { %v2132_v25 = vpop.xlane.xlu1 %2131 }
 0x415   : > { %6247 = vpow2.f32 %v2171_v9  ;;  %v2152_v11 = vsub.f32 %v1667_v39, %v2132_v25  ;;  %v2169_v21 = vmul.f32 1.442695, %v2156_v15 }
 0x416   : > { %6249 = vpow2.f32 %v2163_v8  ;;  %v2150_v29 = vpop.xlane.xlu0 %2149 }
 0x417   : > { %v2158_v12 = vsub.f32 %v2123_v58, %v2150_v29  ;;  %v2161_v13 = vmul.f32 1.442695, %v2152_v11 }
 0x418   : > { %v1231_v16 = vpop.permute.xlu1 %1230 }
 0x419   : > { %v2173_v17 = vmul.f32 1.442695, %v2158_v12  ;;  %6251 = vpow2.f32 %v2161_v13  ;;  %v1246_v18 = vcombine.low %v1223_v63, %v1231_v16  ;;  %v1247_v19 = vcombine.high %v1223_v63, %v1231_v16 }
 0x41a   : > { %v1225_v16 = vpop.permute.xlu0 %1224 }
 0x41b   : > { %6253 = vpow2.f32 %v2173_v17  ;;  %v1254_v33 = vrot.slane %v1246_v18, %v6517_v41  ;;  %v1261_v36 = vrot.slane %v1247_v19, %v6517_v41 }
 0x41c   : > { %6255 = vpow2.f32 %v2165_v14  ;;  %v1235_v22 = vpop.permute.xlu1 %1234 }
 0x41d   : > { %v1262_v30 = vcombine.low %v1227_v61, %v1235_v22  ;;  %v1263_v31 = vcombine.high %v1227_v61, %v1235_v22  ;;  %6257 = vpow2.f32 %v2169_v21 }
 0x41e   : > { %v6674_v32 = vpop.eup %6243 }
 0x41f   : > { %v6677_v34 = vpop.eup %6245  ;;  %v1270_v38 = vrot.slane %v1262_v30, %v6517_v41  ;;  %v1277_v39 = vrot.slane %v1263_v31, %v6517_v41  ;;  %v2187_v40 = vsel %vm1518_vm4, %v6674_v32, 0.0 }
 0x420   : > { %2188 = vadd.xlane.f32.xlu1 %v2187_v40  ;;  %v2175_v46 = vsel %vm1518_vm4, %v6677_v34, 0.0  ;;  %v1229_v14 = vpop.permute.xlu1 %1228 }
 0x421   : > { %v1278_v42 = vcombine.low %v1254_v33, %v1270_v38  ;;  %v1279_v43 = vcombine.high %v1254_v33, %v1270_v38  ;;  %v1294_v35 = vcombine.low %v1261_v36, %v1277_v39  ;;  %v1295_v44 = vcombine.high %v1261_v36, %v1277_v39 }
 0x422   : > { %v6684_v45 = vpop.eup %6247 }
 0x423   : > { %v6688_v47 = vpop.eup %6249  ;;  %v1286_v49 = vrot.slane %v1278_v42, %v6520_v48  ;;  %v1293_v50 = vrot.slane %v1279_v43, %v6520_v48  ;;  %v1302_v51 = vrot.slane %v1294_v35, %v6520_v48  ;;  %v1309_v52 = vrot.slane %v1295_v44, %v6520_v48 }
 0x424   : > { %v2193_v53 = vsel %vm1518_vm4, %v6684_v45, 0.0  ;;  %2176 = vadd.xlane.f32.xlu1 %v2175_v46  ;;  %v2181_v59 = vsel %vm1518_vm4, %v6688_v47, 0.0 }
 0x425   : > { %v1382_v54 = vcombine.low %v1286_v49, %v1293_v50  ;;  %v5519_v55 = vcombine.high %v1286_v49, %v1293_v50  ;;  %v1398_v56 = vcombine.low %v1302_v51, %v1309_v52  ;;  %v5520_v57 = vcombine.high %v1302_v51, %v1309_v52  ;;  %2194 = vadd.xlane.f32.xlu0 %v2193_v53 }
 0x426   : > { %v6696_v58 = vpop.eup %6251 }
 0x427   : > { %v1389_v60 = vrot.slane %v1382_v54, %v6517_v41  ;;  %v1397_v61 = vrot.slane %v5519_v55, %v6517_v41  ;;  %v1405_v62 = vrot.slane %v1398_v56, %v6517_v41  ;;  %v1413_v63 = vrot.slane %v5520_v57, %v6517_v41 }
 0x428   : > { %v6704_v0 = vpop.eup %6253  ;;  %v2178_v1 = vsel %vm1518_vm4, %v6696_v58, 0.0  ;;  %2182 = vadd.xlane.f32.xlu1 %v2181_v59 }
 0x429   : > { %v6708_v2 = vpop.eup %6255  ;;  %2179 = vadd.xlane.f32.xlu0 %v2178_v1  ;;  %v1414_v3 = vcombine.low %v1389_v60, %v1397_v61  ;;  %v1430_v4 = vcombine.low %v1405_v62, %v1413_v63  ;;  %v1415_v5 = vcombine.high %v1389_v60, %v1397_v61  ;;  %v1431_v6 = vcombine.high %v1405_v62, %v1413_v63 }
 0x42a   : > { %v2196_v24 = vsel %vm1518_vm4, %v6704_v0, 0.0  ;;  %v2184_v20 = vsel %vm1518_vm4, %v6708_v2, 0.0  ;;  %v6720_v10 = vpop.eup %6257 }
 0x42b   : > { %v1422_v7 = vrot.slane %v1414_v3, %v6520_v48  ;;  %v1438_v23 = vrot.slane %v1430_v4, %v6520_v48  ;;  %v6715_v8 = vrot.slane %v1415_v5, %v6520_v48  ;;  %v1445_v9 = vrot.slane %v1431_v6, %v6520_v48 }
 0x42c   : > { %2197 = vadd.xlane.f32.xlu1 %v2196_v24  ;;  %v2190_v13 = vsel %vm1518_vm4, %v6720_v10, 0.0 }
 0x42d   : > { %2185 = vadd.xlane.f32.xlu0 %v2184_v20  ;;  %v1446_v25 = vcombine.low %v1422_v7, %v1438_v23  ;;  %v1447_v11 = vcombine.high %v1422_v7, %v1438_v23  ;;  %v1448_v29 = vcombine.low %v6715_v8, %v1445_v9  ;;  %v1449_v12 = vcombine.high %v6715_v8, %v1445_v9 }
 0x42f   : > { %6022 = vmatpush3.msra.mxu0 %v1446_v25  ;;  %6027 = vmatpush3.msra.mxu1 %v1447_v11 }
 0x430   : > { %6031 = vmatprep.subr.mxu0 %v6327_v26  ;;  %6036 = vmatprep.subr.mxu1 %v6327_v26 }
 0x431   : > { %2191 = vadd.xlane.f32.xlu0 %v2190_v13 }
 0x43d   : > { %1236 = vrot.lane.b32.xlu1 %v6492_v27, %s6329_s17 }
 0x447   : > { %1232 = vrot.lane.b32.xlu0 %v6494_v28, %s6329_s17 }
 0x4a9   : > { %v2189_v15 = vpop.xlane.xlu1 %2188 }
 0x4ad   : > { %v2177_v17 = vpop.xlane.xlu1 %2176 }
 0x4ae   : > { %6259 = vrcp.f32 %v2177_v17  ;;  %v2195_v18 = vpop.xlane.xlu0 %2194 }
 0x4b1   : > { %v2183_v19 = vpop.xlane.xlu1 %2182 }
 0x4b2   : > { %6261 = vrcp.f32 %v2183_v19  ;;  %v2180_v21 = vpop.xlane.xlu0 %2179 }
 0x4b3   : > { %6263 = vrcp.f32 %v2180_v21 }
 0x4b5   : > { %v2198_v22 = vpop.xlane.xlu1 %2197 }
 0x4b6   : > { %v2186_v30 = vpop.xlane.xlu0 %2185 }
 0x4b7   : > { %6265 = vrcp.f32 %v2186_v30 }
 0x4b8   : > { %6267 = vrcp.f32 %v2189_v15 }
 0x4b9   : > { %v1237_v31 = vpop.permute.xlu1 %1236 }
 0x4ba   : > { %v2192_v33 = vpop.xlane.xlu0 %2191  ;;  %v1330_v27 = vcombine.low %v1229_v14, %v1237_v31  ;;  %v1331_v28 = vcombine.high %v1229_v14, %v1237_v31 }
 0x4bb   : > { %v6260_v36 = vpop.eup %6259  ;;  %6269 = vrcp.f32 %v2192_v33 }
 0x4bc   : > { %v2207_v38 = vmul.f32 %v6260_v36, %v6677_v34  ;;  %v1338_v44 = vrot.slane %v1330_v27, %v6517_v41  ;;  %v1345_v34 = vrot.slane %v1331_v28, %v6517_v41  ;;  %6271 = vrcp.f32 %v2195_v18 }
 0x4bd   : > { %6273 = vrcp.f32 %v2198_v22 }
 0x4be   : > { %v1233_v39 = vpop.permute.xlu0 %1232  ;;  %6024 = vmatmul.mubr.msk.f32.vlgmr.msra.gmra.mxu0 %vm1518_vm4, %v2207_v38 }
 0x4bf   : > { %v6262_v40 = vpop.eup %6261  ;;  %v1314_v42 = vcombine.low %v1225_v16, %v1233_v39  ;;  %v1315_v43 = vcombine.high %v1225_v16, %v1233_v39  ;;  %6032 = vmatpush3.msra.mxu0 %v1448_v29  ;;  %6033 = vmatprep.mubr.msk.f32.mxu0 %vm6328_vm3, %v6327_v26 }
 0x4c0   : > { %v6264_v35 = vpop.eup %6263  ;;  %v2209_v46 = vmul.f32 %v6262_v40, %v6688_v47  ;;  %6041 = vmatprep.subr.mxu0 %v6327_v26 }
 0x4c1   : > { %v1322_v49 = vrot.slane %v1314_v42, %v6517_v41  ;;  %v1329_v50 = vrot.slane %v1315_v43, %v6517_v41  ;;  %v2208_v51 = vmul.f32 %v6264_v35, %v6696_v58 }
 0x4c2   : > { %6034 = vmatmul.mubr.msk.f32.vlgmr.msra.gmra.mxu0 %vm1518_vm4, %v2209_v46 }
 0x4c3   : > { %v1346_v52 = vcombine.low %v1322_v49, %v1338_v44  ;;  %v1347_v53 = vcombine.high %v1322_v49, %v1338_v44  ;;  %v1362_v54 = vcombine.low %v1329_v50, %v1345_v34  ;;  %v1363_v55 = vcombine.high %v1329_v50, %v1345_v34  ;;  %6029 = vmatmul.mubr.msk.f32.vlgmr.msra.gmra.mxu1 %vm1518_vm4, %v2208_v51 }
 0x4c4   : > { %v6266_v47 = vpop.eup %6265  ;;  %6037 = vmatpush3.msra.mxu1 %v1449_v12  ;;  %6038 = vmatprep.mubr.msk.f32.mxu1 %vm6328_vm3, %v6327_v26 }
 0x4c5   : > { %v1354_v56 = vrot.slane %v1346_v52, %v6520_v48  ;;  %v1361_v57 = vrot.slane %v1347_v53, %v6520_v48  ;;  %v1370_v58 = vrot.slane %v1362_v54, %v6520_v48  ;;  %v1377_v59 = vrot.slane %v1363_v55, %v6520_v48  ;;  %6046 = vmatprep.subr.mxu1 %v6327_v26  ;;  %v6268_v8 = vpop.eup %6267 }
 0x4c6   : > { %v2210_v60 = vmul.f32 %v6266_v47, %v6708_v2  ;;  %6043 = vmatprep.mubr.msk.f32.mxu0 %vm6328_vm3, %v6327_v26  ;;  %v2211_v15 = vmul.f32 %v6268_v8, %v6674_v32 }
 0x4c7   : > { %v1450_v61 = vcombine.low %v1354_v56, %v1361_v57  ;;  %v5521_v62 = vcombine.high %v1354_v56, %v1361_v57  ;;  %v1466_v63 = vcombine.low %v1370_v58, %v1377_v59  ;;  %v5522_v1 = vcombine.high %v1370_v58, %v1377_v59 }
 0x4c8   : > { %6039 = vmatmul.mubr.msk.f32.vlgmr.msra.gmra.mxu1 %vm1518_vm4, %v2210_v60  ;;  %v6270_v20 = vpop.eup %6269 }
 0x4c9   : > { %v1457_v3 = vrot.slane %v1450_v61, %v6517_v41  ;;  %v1465_v4 = vrot.slane %v5521_v62, %v6517_v41  ;;  %v1473_v5 = vrot.slane %v1466_v63, %v6517_v41  ;;  %v1481_v6 = vrot.slane %v5522_v1, %v6517_v41  ;;  %6048 = vmatprep.mubr.msk.f32.mxu1 %vm6328_vm3, %v6327_v26  ;;  %v6272_v12 = vpop.eup %6271 }
 0x4ca   : > { %v2212_v16 = vmul.f32 %v6270_v20, %v6720_v10  ;;  %v6274_v17 = vpop.eup %6273  ;;  %v2213_v21 = vmul.f32 %v6272_v12, %v6684_v45 }
 0x4cb   : > { %v1482_v2 = vcombine.low %v1457_v3, %v1465_v4  ;;  %v1498_v24 = vcombine.low %v1473_v5, %v1481_v6  ;;  %v1483_v7 = vcombine.high %v1457_v3, %v1465_v4  ;;  %v1499_v23 = vcombine.high %v1473_v5, %v1481_v6 }
 0x4cc   : > { %v2214_v32 = vmul.f32 %v6274_v17, %v6704_v0 }
 0x4cd   : > { %v1490_v9 = vrot.slane %v1482_v2, %v6520_v48  ;;  %v1506_v25 = vrot.slane %v1498_v24, %v6520_v48  ;;  %v1497_v11 = vrot.slane %v1483_v7, %v6520_v48  ;;  %v1513_v29 = vrot.slane %v1499_v23, %v6520_v48 }
 0x4cf   : > { %v1514_v13 = vcombine.low %v1490_v9, %v1506_v25  ;;  %v1515_v14 = vcombine.high %v1490_v9, %v1506_v25  ;;  %v1516_v18 = vcombine.low %v1497_v11, %v1513_v29  ;;  %v1517_v19 = vcombine.high %v1497_v11, %v1513_v29 }
 0x4d1   : > { %6042 = vmatpush3.msra.mxu0 %v1514_v13  ;;  %6047 = vmatpush3.msra.mxu1 %v1515_v14 }
 0x4d2   : > { %6044 = vmatmul.mubr.msk.f32.vlgmr.msra.gmra.mxu0 %vm1518_vm4, %v2211_v15  ;;  %6049 = vmatmul.mubr.msk.f32.vlgmr.msra.gmra.mxu1 %vm1518_vm4, %v2212_v16 }
 0x4d3   : > { %6051 = vmatprep.subr.mxu0 %v6327_v26  ;;  %6056 = vmatprep.subr.mxu1 %v6327_v26 }
 0x4d4   : > { %6052 = vmatpush3.msra.mxu0 %v1516_v18  ;;  %6057 = vmatpush3.msra.mxu1 %v1517_v19 }
 0x4d5   : > { %6053 = vmatprep.mubr.msk.f32.mxu0 %vm6328_vm3, %v6327_v26  ;;  %6058 = vmatprep.mubr.msk.f32.mxu1 %vm6328_vm3, %v6327_v26 }
 0x4d6   : > { %6054 = vmatmul.mubr.msk.f32.vlgmr.msra.gmra.mxu0 %vm1518_vm4, %v2213_v21  ;;  %6059 = vmatmul.mubr.msk.f32.vlgmr.msra.gmra.mxu1 %vm1518_vm4, %v2214_v32 }
 0x57e   : > { %v2284_v10 = vpop.f32.mrf.mxu0 }
 0x580   : > { %v6025_v22 = vpop.f32.mrf.mxu0 }
 0x581   : > { %v3106_v22 = vld [vmem:[%s6415_s23 + $0x18] sm:$0xff] }
 0x582   : > { %v2430_v30 = vpop.f32.mrf.mxu0  ;;  %6061 = vmatprep.subr.mxu0 %v3106_v22 }
 0x583   : > { %v2357_v31 = vpop.f32.mrf.mxu1  ;;  %v2799_v27 = vcombine.low %v2284_v10, %v2430_v30  ;;  %v2800_v45 = vcombine.high %v2284_v10, %v2430_v30  ;;  %v3105_v30 = vld [vmem:[%s6415_s23 + $0x10] sm:$0xff]  ;;  %6062 = vmatpush3.msra.mxu0 %v3106_v22 }
 0x584   : > { %v6035_v33 = vpop.f32.mrf.mxu0  ;;  %6063 = vmatprep.subr.mxu0 %v3105_v30 }
 0x585   : > { %v6030_v36 = vpop.f32.mrf.mxu1  ;;  %v2807_v40 = vrot.slane %v2799_v27, %v6517_v41  ;;  %v2814_v26 = vrot.slane %v2800_v45, %v6517_v41  ;;  %6064 = vmatpush3.msra.mxu0 %v3105_v30  ;;  %v5553_v30 = vld [vmem:[%s6430_s19 + $0x11] ss:$0 sm:$0xff] }
 0x588   : > { %v2503_v38 = vpop.f32.mrf.mxu1 }
 0x589   : > { %v2815_v0 = vcombine.low %v2357_v31, %v2503_v38  ;;  %v2816_v28 = vcombine.high %v2357_v31, %v2503_v38 }
 0x58a   : > { %v6040_v39 = vpop.f32.mrf.mxu1 }
 0x58b   : > { %v2823_v42 = vrot.slane %v2815_v0, %v6517_v41  ;;  %v2830_v43 = vrot.slane %v2816_v28, %v6517_v41 }
 0x58d   : > { %v2831_v35 = vcombine.low %v2807_v40, %v2823_v42  ;;  %v2832_v44 = vcombine.high %v2807_v40, %v2823_v42  ;;  %v2847_v46 = vcombine.low %v2814_v26, %v2830_v43  ;;  %v2848_v34 = vcombine.high %v2814_v26, %v2830_v43  ;;  %v3104_v40 = vld [vmem:[%s6415_s23 + $0x8] sm:$0xff]  ;;  %v3103_v26 = vld [vmem:[%s6415_s23] sm:$0xff]  ;;  %s6335_s23 = smov 32  }
 0x58e   : > { %6065 = vmatprep.subr.mxu0 %v3104_v40 }
 0x58f   : > { %v2839_v49 = vrot.slane %v2831_v35, %v6520_v48  ;;  %v2846_v50 = vrot.slane %v2832_v44, %v6520_v48  ;;  %v2855_v51 = vrot.slane %v2847_v46, %v6520_v48  ;;  %v2862_v52 = vrot.slane %v2848_v34, %v6520_v48  ;;  %6066 = vmatpush3.msra.mxu0 %v3104_v40  ;;  %v3242_v40 = vld [vmem:[%s6420_s26 + $0x40] sm:$0xff] }
 0x590   : > { %6067 = vmatprep.subr.mxu0 %v3103_v26 }
 0x591   : > { %v2935_v53 = vcombine.low %v2839_v49, %v2846_v50  ;;  %v5547_v54 = vcombine.high %v2839_v49, %v2846_v50  ;;  %v2951_v55 = vcombine.low %v2855_v51, %v2862_v52  ;;  %v5548_v47 = vcombine.high %v2855_v51, %v2862_v52  ;;  %6068 = vmatpush3.msra.mxu0 %v3103_v26  ;;  %v3235_v26 = vld [vmem:[%s6420_s26 + $0x8] sm:$0xff] }
 0x592   : > { %v2576_v56 = vpop.f32.mrf.mxu0  ;;  %v2649_v57 = vpop.f32.mrf.mxu1 }
 0x593   : > { %v2942_v58 = vrot.slane %v2935_v53, %v6517_v41  ;;  %v2950_v59 = vrot.slane %v5547_v54, %v6517_v41  ;;  %v2958_v60 = vrot.slane %v2951_v55, %v6517_v41  ;;  %v2966_v61 = vrot.slane %v5548_v47, %v6517_v41 }
 0x594   : > { %v6045_v62 = vpop.f32.mrf.mxu0  ;;  %v6050_v63 = vpop.f32.mrf.mxu1 }
 0x595   : > { %v2967_v1 = vcombine.low %v2942_v58, %v2950_v59  ;;  %v2983_v3 = vcombine.low %v2958_v60, %v2966_v61  ;;  %v2968_v6 = vcombine.high %v2942_v58, %v2950_v59  ;;  %v2984_v2 = vcombine.high %v2958_v60, %v2966_v61 }
 0x596   : > { %v2722_v4 = vpop.f32.mrf.mxu0  ;;  %v2795_v5 = vpop.f32.mrf.mxu1 }
 0x597   : > { %v2867_v24 = vcombine.low %v2576_v56, %v2722_v4  ;;  %v2868_v7 = vcombine.high %v2576_v56, %v2722_v4  ;;  %v2883_v23 = vcombine.low %v2649_v57, %v2795_v5  ;;  %v2884_v8 = vcombine.high %v2649_v57, %v2795_v5  ;;  %v6283_v56 = vld [vmem:[%s6430_s19 + $0x10] ss:$0 sm:$0xff] }
 0x598   : > { %v6055_v20 = vpop.f32.mrf.mxu0  ;;  %v6060_v9 = vpop.f32.mrf.mxu1  ;;  %v6793_v25 = vrot.slane %v2967_v1, %v6520_v48  ;;  %v6796_v11 = vrot.slane %v2983_v3, %v6520_v48  ;;  %v2982_v16 = vrot.slane %v2968_v6, %v6520_v48  ;;  %v2998_v17 = vrot.slane %v2984_v2, %v6520_v48 }
 0x599   : > { %v2875_v29 = vrot.slane %v2867_v24, %v6517_v41  ;;  %v2882_v12 = vrot.slane %v2868_v7, %v6517_v41  ;;  %v2891_v13 = vrot.slane %v2883_v23, %v6517_v41  ;;  %v2898_v14 = vrot.slane %v2884_v8, %v6517_v41  ;;  %v6284_v9 = vld [vmem:[#allocation2 + $0x8] sm:$0xff] }
 0x59a   : > { %v3000_v15 = vcombine.high %v6793_v25, %v6796_v11  ;;  %v2999_v18 = vcombine.low %v6793_v25, %v6796_v11  ;;  %v3001_v45 = vcombine.low %v2982_v16, %v2998_v17  ;;  %v3002_v46 = vcombine.high %v2982_v16, %v2998_v17 }
 0x59b   : > { %v2899_v19 = vcombine.low %v2875_v29, %v2891_v13  ;;  %v2900_v21 = vcombine.high %v2875_v29, %v2891_v13  ;;  %v2915_v32 = vcombine.low %v2882_v12, %v2898_v14  ;;  %v2916_v10 = vcombine.high %v2882_v12, %v2898_v14  ;;  %v6285_v29 = vld [vmem:[#allocation2] sm:$0xff] }
 0x59c   : > { %3073 = vrot.lane.b32.xlu0 %v3000_v15, %s6332_s22 }
 0x59d   : > { %v2907_v31 = vrot.slane %v2899_v19, %v6520_v48  ;;  %v2914_v33 = vrot.slane %v2900_v21, %v6520_v48  ;;  %v2923_v36 = vrot.slane %v2915_v32, %v6520_v48  ;;  %v2930_v27 = vrot.slane %v2916_v10, %v6520_v48 }
 0x59f   : > { %v3003_v38 = vcombine.low %v2907_v31, %v2914_v33  ;;  %v5549_v0 = vcombine.high %v2907_v31, %v2914_v33  ;;  %v3019_v28 = vcombine.low %v2923_v36, %v2930_v27  ;;  %v5550_v39 = vcombine.high %v2923_v36, %v2930_v27  ;;  %v3250_v31 = vld [vmem:[%s6420_s26 + $0x80] sm:$0xff]  ;;  %v3251_v36 = vld [vmem:[%s6420_s26 + $0x88] sm:$0xff] }
 0x5a0   : > { %3081 = vrot.lane.b32.xlu0 %v3001_v45, %s6333_s24  ;;  %v3258_v33 = vld [vmem:[%s6420_s26 + $0xc0] sm:$0xff] }
 0x5a1   : > { %v3010_v42 = vrot.slane %v3003_v38, %v6517_v41  ;;  %v3018_v43 = vrot.slane %v5549_v0, %v6517_v41  ;;  %v3026_v35 = vrot.slane %v3019_v28, %v6517_v41  ;;  %v3034_v44 = vrot.slane %v5550_v39, %v6517_v41  ;;  %v3259_v38 = vld [vmem:[%s6420_s26 + $0xc8] sm:$0xff]  ;;  %v3234_v39 = vld [vmem:[%s6420_s26] sm:$0xff] }
 0x5a2   : > { %v5570_v27 = vcombine.low %v3250_v31, %v3258_v33  ;;  %v5571_v45 = vcombine.high %v3250_v31, %v3258_v33  ;;  %v5572_v0 = vcombine.low %v3251_v36, %v3259_v38  ;;  %v5573_v28 = vcombine.high %v3251_v36, %v3259_v38  ;;  %v3256_v31 = vld [vmem:[%s6420_s26 + $0xb0] sm:$0xff]  ;;  %v3257_v36 = vld [vmem:[%s6420_s26 + $0xb8] sm:$0xff] }
 0x5a3   : > { %v3035_v34 = vcombine.low %v3010_v42, %v3018_v43  ;;  %v3051_v49 = vcombine.low %v3026_v35, %v3034_v44  ;;  %v3036_v50 = vcombine.high %v3010_v42, %v3018_v43  ;;  %v3052_v51 = vcombine.high %v3026_v35, %v3034_v44  ;;  %v3243_v35 = vld [vmem:[%s6420_s26 + $0x48] sm:$0xff]  ;;  %v3264_v33 = vld [vmem:[%s6420_s26 + $0xf0] sm:$0xff] }
 0x5a4   : > { %3089 = vrot.lane.b32.xlu0 %v3002_v46, %s6334_s25  ;;  %3523 = vmatprep.subr.bf16.mxu1 %v5571_v45  ;;  %v5554_v42 = vcombine.low %v3234_v39, %v3242_v40  ;;  %v5555_v43 = vcombine.high %v3234_v39, %v3242_v40  ;;  %v6336_v44 = vmov 0   ;;  %v5556_v46 = vcombine.low %v3235_v26, %v3243_v35  ;;  %v3240_v39 = vld [vmem:[%s6420_s26 + $0x30] sm:$0xff] }
 0x5a5   : > { %v3043_v52 = vrot.slane %v3035_v34, %v6520_v48  ;;  %v3059_v53 = vrot.slane %v3051_v49, %v6520_v48  ;;  %v3050_v55 = vrot.slane %v3036_v50, %v6520_v48  ;;  %v3066_v41 = vrot.slane %v3052_v51, %v6520_v48  ;;  %3566 = vmatprep.subr.bf16.mxu0 %v5573_v28  ;;  %v3252_v49 = vld [vmem:[%s6420_s26 + $0x90] sm:$0xff]  ;;  %v3253_v51 = vld [vmem:[%s6420_s26 + $0x98] sm:$0xff] }
 0x5a6   : > { %3524 = vmatpush1.bf16.msra.mxu1 %v5570_v27  ;;  %3543 = vmatprep.mubr.bf16.mxu1 %v6336_v44  ;;  %v5557_v34 = vcombine.high %v3235_v26, %v3243_v35  ;;  %v3260_v50 = vld [vmem:[%s6420_s26 + $0xd0] sm:$0xff]  ;;  %v3265_v27 = vld [vmem:[%s6420_s26 + $0xf8] sm:$0xff] }
 0x5a7   : > { %v3068_v54 = vcombine.high %v3043_v52, %v3059_v53  ;;  %v3067_v47 = vcombine.low %v3043_v52, %v3059_v53  ;;  %v3069_v57 = vcombine.low %v3050_v55, %v3066_v41  ;;  %v3070_v58 = vcombine.high %v3050_v55, %v3066_v41  ;;  %3525 = vmatprep.subr.bf16.mxu1 %v5555_v43  ;;  %v3248_v40 = vld [vmem:[%s6420_s26 + $0x70] sm:$0xff]  ;;  %v3241_v26 = vld [vmem:[%s6420_s26 + $0x38] sm:$0xff] }
 0x5a8   : > { %3107 = vrot.lane.b32.xlu0 %v6283_v56, %s6335_s23  ;;  %v5574_v52 = vcombine.low %v3252_v49, %v3260_v50  ;;  %v5575_v53 = vcombine.high %v3252_v49, %v3260_v50  ;;  %v5585_v28 = vcombine.high %v3257_v36, %v3265_v27  ;;  %v5582_v43 = vcombine.low %v3256_v31, %v3264_v33 }
 0x5a9   : > { %3075 = vrot.lane.b32.xlu1 %v3068_v54, %s6332_s22  ;;  %v3261_v54 = vld [vmem:[%s6420_s26 + $0xd8] sm:$0xff]  ;;  %v5584_v35 = vcombine.low %v3257_v36, %v3265_v27  ;;  %v5566_v49 = vcombine.low %v3240_v39, %v3248_v40 }
 0x5aa   : > { %3526 = vmatpush1.bf16.msra.mxu1 %v5554_v42  ;;  %v5576_v55 = vcombine.low %v3253_v51, %v3261_v54  ;;  %v5577_v41 = vcombine.high %v3253_v51, %v3261_v54  ;;  %v3249_v42 = vld [vmem:[%s6420_s26 + $0x78] sm:$0xff] }
 0x5ab   : > { %3609 = vmatprep.subr.bf16.mxu1 %v5575_v53  ;;  %v5568_v50 = vcombine.low %v3241_v26, %v3249_v42  ;;  %v6115_v51 = vld [vmem:[%s6425_s30 + $0x78] sm:$0xff]  }
 0x5ac   : > { %v6117_v53 = vld [vmem:[%s6425_s30 + $0x38] sm:$0xff]  }
 0x5ad   : > { %3083 = vrot.lane.b32.xlu1 %v3069_v57, %s6333_s24  ;;  %v6118_v54 = vld [vmem:[%s6425_s30 + $0xb8] sm:$0xff]  }
 0x5b1   : > { %3091 = vrot.lane.b32.xlu1 %v3070_v58, %s6334_s25 }
 0x60e   : > { %v3074_v59 = vpop.permute.xlu0 %3073 }
 0x60f   : > { %v3095_v61 = vsel %vm1518_vm4, %v2999_v18, %v3074_v59 }
 0x612   : > { %v3082_v60 = vpop.permute.xlu0 %3081 }
 0x613   : > { %v3098_v62 = vsel %vm3097_vm5, %v3095_v61, %v3082_v60 }
 0x616   : > { %v3090_v48 = vpop.permute.xlu0 %3089 }
 0x617   : > { %v3101_v63 = vsel %vm3100_vm6, %v3098_v62, %v3090_v48 }
 0x618   : > { %6069 = vmatprep.mubr.msk.f32.mxu0 %vm536_vm2, %v3101_v63 }
 0x61a   : > { %v3108_v24 = vpop.permute.xlu0 %3107 }
 0x61b   : > { %v3076_v1 = vpop.permute.xlu1 %3075 }
 0x61c   : > { %v3096_v4 = vsel %vm1518_vm4, %v3067_v47, %v3076_v1 }
 0x61f   : > { %v3084_v3 = vpop.permute.xlu1 %3083 }
 0x620   : > { %v3099_v5 = vsel %vm3097_vm5, %v3096_v4, %v3084_v3 }
 0x623   : > { %v3092_v6 = vpop.permute.xlu1 %3091 }
 0x624   : > { %v3102_v2 = vsel %vm3100_vm6, %v3099_v5, %v3092_v6  ;;  %v3236_v5 = vld [vmem:[%s6420_s26 + $0x10] sm:$0xff] }
 0x625   : > { %6070 = vmatmul.mubr.msk.f32.vlgmr.msra.gmra.mxu0 %vm536_vm2, %v3102_v2  ;;  %v3244_v6 = vld [vmem:[%s6420_s26 + $0x50] sm:$0xff]  ;;  %v3237_v2 = vld [vmem:[%s6420_s26 + $0x18] sm:$0xff] }
 0x626   : > { %3567 = vmatpush1.bf16.msra.mxu0 %v5572_v0  ;;  %3586 = vmatprep.mubr.bf16.mxu0 %v6336_v44  ;;  %v5583_v0 = vcombine.high %v3256_v31, %v3264_v33 }
 0x627   : > { %3568 = vmatprep.subr.bf16.mxu0 %v5557_v34  ;;  %v5569_v34 = vcombine.high %v3241_v26, %v3249_v42 }
 0x62a   : > { %3569 = vmatpush1.bf16.msra.mxu0 %v5556_v46  ;;  %v5567_v46 = vcombine.high %v3240_v39, %v3248_v40 }
 0x62b   : > { %3652 = vmatprep.subr.bf16.mxu0 %v5577_v41  ;;  %v6120_v41 = vld [vmem:[%s6425_s30 + $0xf0] sm:$0xff]  }
 0x6e5   : > { %v6071_v7 = vpop.f32.mrf.mxu0 }
 0x6e6   : > { %v3188_v23 = vadd.f32 %v6071_v7, %v3108_v24 }
 0x6e7   : > { %v3182_v8 = vpop.f32.mrf.mxu0 }
 0x6e8   : > { %v3183_v20 = vadd.f32 %v3182_v8, %v3108_v24  ;;  %v3192_v25 = vadd.f32 %v6284_v9, %v3188_v23  ;;  %v3245_v24 = vld [vmem:[%s6420_s26 + $0x58] sm:$0xff] }
 0x6e9   : > { %v5561_v9 = vcombine.high %v3237_v2, %v3245_v24 }
 0x6ea   : > { %v3196_v11 = vsel %vm536_vm2, %v3192_v25, 0.0  ;;  %v3191_v12 = vadd.f32 %v6285_v29, %v3183_v20  ;;  %v5559_v20 = vcombine.high %v3236_v5, %v3244_v6  ;;  %v3255_v29 = vld [vmem:[%s6420_s26 + $0xa8] sm:$0xff] }
 0x6eb   : > { %3197 = vadd.xlane.f32.xlu0 %v3196_v11  ;;  %v3262_v11 = vld [vmem:[%s6420_s26 + $0xe0] sm:$0xff] }
 0x6ec   : > { %v3193_v13 = vsel %vm536_vm2, %v3191_v12, 0.0 }
 0x6ed   : > { %3194 = vadd.xlane.f32.xlu1 %v3193_v13  ;;  %v5558_v13 = vcombine.low %v3236_v5, %v3244_v6  ;;  %v6135_v5 = vld [vmem:[%s6425_s30 + $0x50] sm:$0xff]  }
 0x6ee   : > { %v6136_v6 = vld [vmem:[%s6425_s30 + $0xd0] sm:$0xff]  }
 0x774   : > { %v3198_v14 = vpop.xlane.xlu0 %3197 }
 0x775   : > { %v3201_v15 = vmul.f32 0.03125, %v3198_v14  ;;  %v5560_v14 = vcombine.low %v3237_v2, %v3245_v24  ;;  %v6137_v2 = vld [vmem:[%s6425_s30 + $0x10] sm:$0xff]  }
 0x776   : > { %v3195_v16 = vpop.xlane.xlu1 %3194  ;;  %v6138_v24 = vld [vmem:[%s6425_s30 + $0x90] sm:$0xff]  }
 0x777   : > { %v3203_v17 = vsub.f32 %v3192_v25, %v3201_v15  ;;  %v3200_v18 = vmul.f32 0.03125, %v3195_v16  ;;  %v3254_v25 = vld [vmem:[%s6420_s26 + $0xa0] sm:$0xff] }
 0x778   : > { %v5579_v15 = vcombine.high %v3254_v25, %v3262_v11 }
 0x779   : > { %v3202_v19 = vsub.f32 %v3191_v12, %v3200_v18  ;;  %v3205_v21 = vmul.f32 %v3203_v17, %v3203_v17  ;;  %v3263_v12 = vld [vmem:[%s6420_s26 + $0xe8] sm:$0xff]  ;;  %v3246_v18 = vld [vmem:[%s6420_s26 + $0x60] sm:$0xff] }
 0x77a   : > { %v5581_v16 = vcombine.high %v3255_v29, %v3263_v12 }
 0x77b   : > { %v3209_v32 = vsel %vm536_vm2, %v3205_v21, 0.0  ;;  %v3204_v10 = vmul.f32 %v3202_v19, %v3202_v19  ;;  %v3247_v21 = vld [vmem:[%s6420_s26 + $0x68] sm:$0xff] }
 0x77c   : > { %3210 = vadd.xlane.f32.xlu1 %v3209_v32  ;;  %v5578_v32 = vcombine.low %v3254_v25, %v3262_v11  ;;  %v6142_v25 = vld [vmem:[%s6425_s30 + $0x88] sm:$0xff]   ;;  %v6143_v11 = vld [vmem:[%s6425_s30 + $0x40] sm:$0xff]  }
 0x77d   : > { %v3206_v22 = vsel %vm536_vm2, %v3204_v10, 0.0  ;;  %v5580_v10 = vcombine.low %v3255_v29, %v3263_v12  ;;  %v6144_v29 = vld [vmem:[%s6425_s30 + $0xc0] sm:$0xff]  }
 0x77e   : > { %3207 = vadd.xlane.f32.xlu0 %v3206_v22  ;;  %v6145_v12 = vld [vmem:[%s6425_s30] sm:$0xff]  }
 0x78d   : > { %4927 = vrot.lane.b32.xlu1 %v5553_v30, %s6329_s17 }
 0x794   : > { %3228 = vrot.lane.b32.xlu0 %v5553_v30, %s6326_s21 }
 0x805   : > { %v3211_v47 = vpop.xlane.xlu1 %3210 }
 0x806   : > { %v3213_v56 = vmul.f32 0.03125, %v3211_v47  ;;  %v6122_v47 = vld [vmem:[%s6425_s30 + $0xb0] sm:$0xff]  }
 0x807   : > { %v3208_v57 = vpop.xlane.xlu0 %3207 }
 0x808   : > { %v3215_v58 = vadd.f32 1e-05, %v3213_v56  ;;  %v3212_v59 = vmul.f32 0.03125, %v3208_v57  ;;  %v6123_v56 = vld [vmem:[%s6425_s30 + $0x68] sm:$0xff]  }
 0x809   : > { %v6124_v57 = vld [vmem:[%s6425_s30 + $0xe8] sm:$0xff]  }
 0x80a   : > { %6275 = vrsqrt.f32 %v3215_v58  ;;  %v3214_v60 = vadd.f32 1e-05, %v3212_v59  ;;  %v6125_v58 = vld [vmem:[%s6425_s30 + $0x28] sm:$0xff]  }
 0x80b   : > { %v3229_v3 = vpop.permute.xlu0 %3228  ;;  %v6126_v59 = vld [vmem:[%s6425_s30 + $0xa8] sm:$0xff]  }
 0x80c   : > { %6277 = vrsqrt.f32 %v3214_v60  ;;  %v6127_v60 = vld [vmem:[%s6425_s30 + $0x60] sm:$0xff]  }
 0x817   : > { %v6276_v61 = vpop.eup %6275 }
 0x818   : > { %v3219_v62 = vmul.f32 %v6276_v61, %v3203_v17  ;;  %v3238_v17 = vld [vmem:[%s6420_s26 + $0x20] sm:$0xff] }
 0x819   : > { %v6278_v48 = vpop.eup %6277  ;;  %v5563_v22 = vcombine.high %v3238_v17, %v3246_v18  ;;  %v5562_v45 = vcombine.low %v3238_v17, %v3246_v18  ;;  %v6128_v61 = vld [vmem:[%s6425_s30 + $0xe0] sm:$0xff]   ;;  %v3282_v17 = vsub.s32 3, %v6514_v37  ;;  %v3270_v18 = vsub.s32 0, %v6514_v37 }
 0x81a   : > { %v3218_v63 = vmul.f32 %v6278_v48, %v3202_v19  ;;  %v3227_v1 = vmul.f32 %v5553_v30, %v3219_v62  ;;  %v3239_v19 = vld [vmem:[%s6420_s26 + $0x28] sm:$0xff]  ;;  %v6129_v62 = vld [vmem:[%s6425_s30 + $0x20] sm:$0xff]  }
 0x81b   : > { %v5564_v38 = vcombine.low %v3239_v19, %v3247_v21  ;;  %v6130_v48 = vld [vmem:[%s6425_s30 + $0xa0] sm:$0xff]  }
 0x81c   : > { %v3226_v4 = vmul.f32 %v5553_v30, %v3218_v63  ;;  %v6861_v23 = vadd.f32 %v3229_v3, %v3227_v1  ;;  %v5565_v30 = vcombine.high %v3239_v19, %v3247_v21  ;;  %v6131_v63 = vld [vmem:[%s6425_s30 + $0x58] sm:$0xff]   ;;  %v3278_v19 = vsub.s32 2, %v6514_v37  ;;  %v6944_v21 = vld [vmem:[%s6430_s19] sm:$0xff] }
 0x81d   : > { %v6132_v1 = vld [vmem:[%s6425_s30 + $0xd8] sm:$0xff]   ;;  %v3271_v31 = vrot.slane %v6944_v21, %v3270_v18 }
 0x81e   : > { %v6859_v7 = vadd.f32 %v3229_v3, %v3226_v4  ;;  %v6133_v3 = vld [vmem:[%s6425_s30 + $0x18] sm:$0xff]   ;;  %v3279_v33 = vrot.slane %v6944_v21, %v3278_v19 }
 0x81f   : > { %v6134_v4 = vld [vmem:[%s6425_s30 + $0x98] sm:$0xff]  }
 0x820   : > { %v6865_v8 = vpack.c.bf16 %v6861_v23, %v6859_v7 }
 0x822   : > { %5586 = vmatmul.mubr.msk.bf16.vlgmr.msra.gmra.mxu1 %vm536_vm2, %v6865_v8  ;;  %5587 = vmatmul.mubr.msk.bf16.vlgmr.msra.gmra.mxu0 %vm536_vm2, %v6865_v8 }
 0x823   : > { %3610 = vmatpush1.bf16.msra.mxu1 %v5574_v52  ;;  %3653 = vmatpush1.bf16.msra.mxu0 %v5576_v55  ;;  %v6116_v52 = vld [vmem:[%s6425_s30 + $0xf8] sm:$0xff]   ;;  %v6119_v55 = vld [vmem:[%s6425_s30 + $0x70] sm:$0xff]  }
 0x824   : > { %3611 = vmatprep.subr.bf16.mxu1 %v5559_v20  ;;  %3654 = vmatprep.subr.bf16.mxu0 %v5561_v9  ;;  %v6140_v20 = vld [vmem:[%s6425_s30 + $0xc8] sm:$0xff]  }
 0x825   : > { %3629 = vmatprep.mubr.bf16.mxu1 %v6336_v44  ;;  %3672 = vmatprep.mubr.bf16.mxu0 %v6336_v44  ;;  %v6141_v9 = vld [vmem:[%s6425_s30 + $0x8] sm:$0xff]  }
 0x827   : > { %3612 = vmatpush1.bf16.msra.mxu1 %v5558_v13  ;;  %3655 = vmatpush1.bf16.msra.mxu0 %v5560_v14  ;;  %v6146_v13 = vld [vmem:[%s6425_s30 + $0x80] sm:$0xff]   ;;  %v6147_v14 = vld [vmem:[%s6425_s30 + $0x178] sm:$0xff]  }
 0x828   : > { %3695 = vmatprep.subr.bf16.mxu1 %v5579_v15  ;;  %3738 = vmatprep.subr.bf16.mxu0 %v5581_v16  ;;  %v6148_v15 = vld [vmem:[%s6425_s30 + $0x1f8] sm:$0xff]   ;;  %v3274_v16 = vsub.s32 1, %v6514_v37 }
 0x82a   : > { %5588 = vmatmul.mubr.msk.bf16.vlgmr.msra.gmra.mxu1 %vm536_vm2, %v6865_v8  ;;  %5589 = vmatmul.mubr.msk.bf16.vlgmr.msra.gmra.mxu0 %vm536_vm2, %v6865_v8 }
 0x82b   : > { %3696 = vmatpush1.bf16.msra.mxu1 %v5578_v32  ;;  %3739 = vmatpush1.bf16.msra.mxu0 %v5580_v10 }
 0x82c   : > { %3697 = vmatprep.subr.bf16.mxu1 %v5563_v22  ;;  %3740 = vmatprep.subr.bf16.mxu0 %v5565_v30  ;;  %v3275_v22 = vrot.slane %v6944_v21, %v3274_v16  ;;  %v3283_v30 = vrot.slane %v6944_v21, %v3282_v17 }
 0x82d   : > { %3715 = vmatprep.mubr.bf16.mxu1 %v6336_v44  ;;  %3758 = vmatprep.mubr.bf16.mxu0 %v6336_v44 }
 0x82f   : > { %3698 = vmatpush1.bf16.msra.mxu1 %v5562_v45  ;;  %3741 = vmatpush1.bf16.msra.mxu0 %v5564_v38 }
 0x830   : > { %3781 = vmatprep.subr.bf16.mxu1 %v5583_v0  ;;  %3824 = vmatprep.subr.bf16.mxu0 %v5585_v28  ;;  %v3290_v0 = vsub.s32 5, %v6514_v37  ;;  %v3298_v28 = vsub.s32 7, %v6514_v37 }
 0x832   : > { %5590 = vmatmul.mubr.msk.bf16.vlgmr.msra.gmra.mxu1 %vm536_vm2, %v6865_v8  ;;  %5591 = vmatmul.mubr.msk.bf16.vlgmr.msra.gmra.mxu0 %vm536_vm2, %v6865_v8 }
 0x833   : > { %3782 = vmatpush1.bf16.msra.mxu1 %v5582_v43  ;;  %3825 = vmatpush1.bf16.msra.mxu0 %v5584_v35 }
 0x834   : > { %3783 = vmatprep.subr.bf16.mxu1 %v5567_v46  ;;  %3826 = vmatprep.subr.bf16.mxu0 %v5569_v34 }
 0x835   : > { %3801 = vmatprep.mubr.bf16.mxu1 %v6336_v44  ;;  %3844 = vmatprep.mubr.bf16.mxu0 %v6336_v44  ;;  %v6121_v44 = vld [vmem:[%s6425_s30 + $0x30] sm:$0xff]  }
 0x837   : > { %3784 = vmatpush1.bf16.msra.mxu1 %v5566_v49  ;;  %3827 = vmatpush1.bf16.msra.mxu0 %v5568_v50 }
 0x838   : > { %5782 = vmatprep.subr.bf16.mxu1 %v6115_v51  ;;  %5804 = vmatprep.subr.bf16.mxu0 %v6116_v52 }
 0x83a   : > { %5592 = vmatmul.mubr.msk.bf16.vlgmr.msra.gmra.mxu1 %vm536_vm2, %v6865_v8  ;;  %5593 = vmatmul.mubr.msk.bf16.vlgmr.msra.gmra.mxu0 %vm536_vm2, %v6865_v8  ;;  %v6139_v8 = vld [vmem:[%s6425_s30 + $0x48] sm:$0xff]  }
 0x83b   : > { %5783 = vmatpush3.bf16.msra.mxu1 %v6117_v53  ;;  %5805 = vmatpush3.bf16.msra.mxu0 %v6118_v54 }
 0x83c   : > { %5784 = vmatprep.subr.bf16.mxu1 %v6119_v55  ;;  %5806 = vmatprep.subr.bf16.mxu0 %v6120_v41  ;;  %v3291_v55 = vrot.slane %v6944_v21, %v3290_v0  ;;  %v3299_v41 = vrot.slane %v6944_v21, %v3298_v28 }
 0x83f   : > { %5785 = vmatpush3.bf16.msra.mxu1 %v6121_v44  ;;  %5807 = vmatpush3.bf16.msra.mxu0 %v6122_v47 }
 0x840   : > { %5786 = vmatprep.subr.bf16.mxu1 %v6123_v56  ;;  %5808 = vmatprep.subr.bf16.mxu0 %v6124_v57 }
 0x843   : > { %5787 = vmatpush3.bf16.msra.mxu1 %v6125_v58  ;;  %5809 = vmatpush3.bf16.msra.mxu0 %v6126_v59 }
 0x844   : > { %5788 = vmatprep.subr.bf16.mxu1 %v6127_v60  ;;  %5810 = vmatprep.subr.bf16.mxu0 %v6128_v61 }
 0x847   : > { %5789 = vmatpush3.bf16.msra.mxu1 %v6129_v62  ;;  %5811 = vmatpush3.bf16.msra.mxu0 %v6130_v48 }
 0x848   : > { %5790 = vmatprep.subr.bf16.mxu1 %v6131_v63  ;;  %5812 = vmatprep.subr.bf16.mxu0 %v6132_v1  ;;  %v6149_v63 = vld [vmem:[%s6425_s30 + $0x138] sm:$0xff]  }
 0x849   : > { %v6150_v1 = vld [vmem:[%s6425_s30 + $0x1b8] sm:$0xff]  }
 0x84b   : > { %5791 = vmatpush3.bf16.msra.mxu1 %v6133_v3  ;;  %5813 = vmatpush3.bf16.msra.mxu0 %v6134_v4 }
 0x84c   : > { %5792 = vmatprep.subr.bf16.mxu1 %v6135_v5  ;;  %5814 = vmatprep.subr.bf16.mxu0 %v6136_v6 }
 0x84f   : > { %5793 = vmatpush3.bf16.msra.mxu1 %v6137_v2  ;;  %5815 = vmatpush3.bf16.msra.mxu0 %v6138_v24  ;;  %v6151_v2 = vld [vmem:[%s6425_s30 + $0x170] sm:$0xff]  }
 0x850   : > { %5794 = vmatprep.subr.bf16.mxu1 %v6139_v8  ;;  %5816 = vmatprep.subr.bf16.mxu0 %v6140_v20  ;;  %v6152_v24 = vld [vmem:[%s6425_s30 + $0x1f0] sm:$0xff]  }
 0x853   : > { %5795 = vmatpush3.bf16.msra.mxu1 %v6141_v9  ;;  %5817 = vmatpush3.bf16.msra.mxu0 %v6142_v25 }
 0x854   : > { %5796 = vmatprep.subr.bf16.mxu1 %v6143_v11  ;;  %5818 = vmatprep.subr.bf16.mxu0 %v6144_v29 }
 0x857   : > { %5797 = vmatpush3.bf16.msra.mxu1 %v6145_v12  ;;  %5819 = vmatpush3.bf16.msra.mxu0 %v6146_v13  ;;  %v6153_v12 = vld [vmem:[%s6425_s30 + $0x130] sm:$0xff]  }
 0x858   : > { %5826 = vmatprep.subr.bf16.mxu1 %v6147_v14  ;;  %5848 = vmatprep.subr.bf16.mxu0 %v6148_v15  ;;  %v6154_v13 = vld [vmem:[%s6425_s30 + $0x1b0] sm:$0xff]   ;;  %v6155_v14 = vld [vmem:[%s6425_s30 + $0x168] sm:$0xff]  }
 0x8e2   : > { %v3545_v32 = vpop.f32.mrf.mxu1  ;;  %v3588_v10 = vpop.f32.mrf.mxu0 }
 0x8e3   : > { %v3546_v43 = vadd.f32 %v3545_v32, %v3271_v31  ;;  %v3589_v35 = vadd.f32 %v3588_v10, %v3279_v33 }
 0x8e4   : > { %v3547_v36 = vpop.f32.mrf.mxu1  ;;  %v3590_v27 = vpop.f32.mrf.mxu0 }
 0x8e5   : > { %v3548_v39 = vadd.f32 %v3547_v36, %v3275_v22  ;;  %v3591_v40 = vadd.f32 %v3590_v27, %v3283_v30  ;;  %v3855_v58 = vmax.f32 %v3546_v43, 0.0  ;;  %v3857_v59 = vmax.f32 %v3589_v35, 0.0  ;;  %v6157_v36 = vld [vmem:[%s6425_s30 + $0x128] sm:$0xff]   ;;  %v6163_v43 = vld [vmem:[%s6425_s30 + $0x158] sm:$0xff]  }
 0x8e6   : > { %v3549_v45 = vpop.f32.mrf.mxu1  ;;  %v3592_v38 = vpop.f32.mrf.mxu0  ;;  %v6158_v27 = vld [vmem:[%s6425_s30 + $0x1a8] sm:$0xff]   ;;  %v6164_v35 = vld [vmem:[%s6425_s30 + $0x1d8] sm:$0xff]  }
 0x8e7   : > { %v3550_v26 = vadd.f32 %v3549_v45, %v3271_v31  ;;  %v3593_v42 = vadd.f32 %v3592_v38, %v3279_v33  ;;  %v3856_v44 = vmax.f32 %v3548_v39, 0.0  ;;  %v3858_v47 = vmax.f32 %v3591_v40, 0.0  ;;  %v6159_v45 = vld [vmem:[%s6425_s30 + $0x160] sm:$0xff]  }
 0x8e8   : > { %v3551_v46 = vpop.f32.mrf.mxu1  ;;  %v3594_v34 = vpop.f32.mrf.mxu0  ;;  %v6160_v38 = vld [vmem:[%s6425_s30 + $0x1e0] sm:$0xff]  }
 0x8e9   : > { %v3552_v49 = vadd.f32 %v3551_v46, %v3275_v22  ;;  %v3595_v50 = vadd.f32 %v3594_v34, %v3283_v30  ;;  %v3871_v51 = vmax.f32 %v3550_v26, 0.0  ;;  %v3873_v52 = vmax.f32 %v3593_v42, 0.0  ;;  %v6156_v30 = vld [vmem:[%s6425_s30 + $0x1e8] sm:$0xff]   ;;  %v6161_v40 = vld [vmem:[%s6425_s30 + $0x120] sm:$0xff]   ;;  %v6165_v34 = vld [vmem:[%s6425_s30 + $0x118] sm:$0xff]  }
 0x8ea   : > { %v6960_v53 = vpop.f32.mrf.mxu1  ;;  %v6962_v54 = vpop.f32.mrf.mxu0  ;;  %v6162_v42 = vld [vmem:[%s6425_s30 + $0x1a0] sm:$0xff]  }
 0x8eb   : > { %v3872_v56 = vmax.f32 %v3552_v49, 0.0  ;;  %v3874_v57 = vmax.f32 %v3595_v50, 0.0  ;;  %v3887_v3 = vpack.c.bf16 %v3871_v51, %v3855_v58  ;;  %v3889_v4 = vpack.c.bf16 %v3873_v52, %v3857_v59  ;;  %v6166_v50 = vld [vmem:[%s6425_s30 + $0x198] sm:$0xff]   ;;  %v6167_v51 = vld [vmem:[%s6425_s30 + $0x150] sm:$0xff]   ;;  %v6171_v58 = vld [vmem:[%s6425_s30 + $0x148] sm:$0xff]  }
 0x8ec   : > { %v3633_v60 = vpop.f32.mrf.mxu1  ;;  %v3676_v61 = vpop.f32.mrf.mxu0  ;;  %v6168_v52 = vld [vmem:[%s6425_s30 + $0x1d0] sm:$0xff]   ;;  %v6172_v59 = vld [vmem:[%s6425_s30 + $0x1c8] sm:$0xff]  }
 0x8ed   : > { %v3888_v62 = vpack.c.bf16 %v3872_v56, %v3856_v44  ;;  %v3890_v48 = vpack.c.bf16 %v3874_v57, %v3858_v47  ;;  %v3634_v8 = vadd.f32 %v3633_v60, %v3291_v55  ;;  %v3677_v20 = vadd.f32 %v3676_v61, %v3299_v41  ;;  %v6169_v47 = vld [vmem:[%s6425_s30 + $0x110] sm:$0xff]  }
 0x8ee   : > { %v6972_v5 = vpop.f32.mrf.mxu1  ;;  %v6974_v6 = vpop.f32.mrf.mxu0  ;;  %v6170_v57 = vld [vmem:[%s6425_s30 + $0x190] sm:$0xff]  }
 0x8ef   : > { %4962 = vmatprep.mubr.bf16.mxu1 %v3888_v62  ;;  %5003 = vmatprep.mubr.bf16.mxu0 %v3890_v48  ;;  %v3860_v15 = vmax.f32 %v3634_v8, 0.0  ;;  %v3862_v32 = vmax.f32 %v3677_v20, 0.0  ;;  %v7015_v62 = vld [vmem:[%s6430_s19 + $0x8] sm:$0xff] }
 0x8f0   : > { %v3637_v9 = vpop.f32.mrf.mxu1  ;;  %v3680_v25 = vpop.f32.mrf.mxu0  ;;  %4963 = vmatmul.mubr.bf16.vlgmr.msra.gmra.mxu1 %v3887_v3  ;;  %5004 = vmatmul.mubr.bf16.vlgmr.msra.gmra.mxu0 %v3889_v4  ;;  %v3307_v3 = vrot.slane %v7015_v62, %v3274_v16  ;;  %v3315_v8 = vrot.slane %v7015_v62, %v3282_v17 }
 0x8f1   : > { %v3638_v11 = vadd.f32 %v3637_v9, %v3291_v55  ;;  %v3681_v29 = vadd.f32 %v3680_v25, %v3299_v41  ;;  %5827 = vmatpush3.bf16.msra.mxu1 %v6149_v63  ;;  %5849 = vmatpush3.bf16.msra.mxu0 %v6150_v1  ;;  %v3286_v55 = vsub.s32 4, %v6514_v37  ;;  %v3294_v41 = vsub.s32 6, %v6514_v37  ;;  %v6173_v63 = vld [vmem:[%s6425_s30 + $0x108] sm:$0xff]   ;;  %v6241_v37 = vld [vmem:[%s6425_s30 + $0x300] sm:$0xff]  }
 0x8f2   : > { %5828 = vmatprep.subr.bf16.mxu1 %v6151_v2  ;;  %5850 = vmatprep.subr.bf16.mxu0 %v6152_v24  ;;  %v6986_v39 = vpop.f32.mrf.mxu1  ;;  %v6989_v26 = vpop.f32.mrf.mxu0  ;;  %v6174_v2 = vld [vmem:[%s6425_s30 + $0x188] sm:$0xff]   ;;  %v6175_v24 = vld [vmem:[%s6425_s30 + $0x140] sm:$0xff]  }
 0x8f3   : > { %v3876_v10 = vmax.f32 %v3638_v11, 0.0  ;;  %v3878_v22 = vmax.f32 %v3681_v29, 0.0  ;;  %v3287_v60 = vrot.slane %v6944_v21, %v3286_v55  ;;  %v3295_v61 = vrot.slane %v6944_v21, %v3294_v41  ;;  %v6177_v11 = vld [vmem:[%s6425_s30 + $0x100] sm:$0xff]  }
 0x8f4   : > { %v3719_v46 = vpop.f32.mrf.mxu1  ;;  %v3762_v49 = vpop.f32.mrf.mxu0 }
 0x8f5   : > { %v3892_v31 = vpack.c.bf16 %v3876_v10, %v3860_v15  ;;  %v3894_v33 = vpack.c.bf16 %v3878_v22, %v3862_v32  ;;  %5829 = vmatpush3.bf16.msra.mxu1 %v6153_v12  ;;  %5851 = vmatpush3.bf16.msra.mxu0 %v6154_v13  ;;  %v3636_v1 = vadd.f32 %v6972_v5, %v3287_v60  ;;  %v6176_v5 = vld [vmem:[%s6425_s30 + $0x1c0] sm:$0xff]   ;;  %v6179_v13 = vld [vmem:[%s6425_s30 + $0x278] sm:$0xff]  }
 0x8f6   : > { %5830 = vmatprep.subr.bf16.mxu1 %v6155_v14  ;;  %5852 = vmatprep.subr.bf16.mxu0 %v6156_v30  ;;  %v7000_v44 = vpop.f32.mrf.mxu1  ;;  %v7003_v56 = vpop.f32.mrf.mxu0  ;;  %v3679_v21 = vadd.f32 %v6974_v6, %v3295_v61  ;;  %v3632_v20 = vadd.f32 %v6960_v53, %v3287_v60  ;;  %v3675_v16 = vadd.f32 %v6962_v54, %v3295_v61  ;;  %v6178_v6 = vld [vmem:[%s6425_s30 + $0x180] sm:$0xff]   ;;  %v6180_v15 = vld [vmem:[%s6425_s30 + $0x2f8] sm:$0xff]  }
 0x8f7   : > { %5044 = vmatprep.mubr.bf16.mxu1 %v3892_v31  ;;  %5085 = vmatprep.mubr.bf16.mxu0 %v3894_v33  ;;  %v3875_v29 = vmax.f32 %v3636_v1, 0.0  ;;  %v3720_v12 = vadd.f32 %v3719_v46, %v3307_v3  ;;  %v3763_v14 = vadd.f32 %v3762_v49, %v3315_v8  ;;  %v6181_v22 = vld [vmem:[%s6425_s30 + $0x238] sm:$0xff]   ;;  %v6187_v46 = vld [vmem:[%s6425_s30 + $0x268] sm:$0xff]  }
 0x8f8   : > { %v3723_v48 = vpop.f32.mrf.mxu1  ;;  %v3766_v4 = vpop.f32.mrf.mxu0  ;;  %v3877_v17 = vmax.f32 %v3679_v21, 0.0  ;;  %v3859_v53 = vmax.f32 %v3632_v20, 0.0  ;;  %v3861_v54 = vmax.f32 %v3675_v16, 0.0  ;;  %v6182_v33 = vld [vmem:[%s6425_s30 + $0x2b8] sm:$0xff]   ;;  %v6189_v49 = vld [vmem:[%s6425_s30 + $0x228] sm:$0xff]   ;;  %v6201_v21 = vld [vmem:[%s6425_s30 + $0x210] sm:$0xff]   ;;  %v3303_v16 = vrot.slane %v7015_v62, %v3270_v18 }
 0x8f9   : > { %5831 = vmatpush3.bf16.msra.mxu1 %v6157_v36  ;;  %5853 = vmatpush3.bf16.msra.mxu0 %v6158_v27  ;;  %v3724_v9 = vadd.f32 %v3723_v48, %v3307_v3  ;;  %v3767_v25 = vadd.f32 %v3766_v4, %v3315_v8  ;;  %v3864_v31 = vmax.f32 %v3720_v12, 0.0  ;;  %v3866_v27 = vmax.f32 %v3763_v14, 0.0  ;;  %v6195_v60 = vld [vmem:[%s6425_s30 + $0x258] sm:$0xff]   ;;  %v6199_v4 = vld [vmem:[%s6425_s30 + $0x250] sm:$0xff]   ;;  %v6203_v20 = vld [vmem:[%s6425_s30 + $0x248] sm:$0xff]  }
 0x8fa   : > { %5832 = vmatprep.subr.bf16.mxu1 %v6159_v45  ;;  %5854 = vmatprep.subr.bf16.mxu0 %v6160_v38  ;;  %v3891_v30 = vpack.c.bf16 %v3875_v29, %v3859_v53  ;;  %v3893_v36 = vpack.c.bf16 %v3877_v17, %v3861_v54  ;;  %v6183_v45 = vld [vmem:[%s6425_s30 + $0x270] sm:$0xff]   ;;  %v6196_v61 = vld [vmem:[%s6425_s30 + $0x2d8] sm:$0xff]   ;;  %v6205_v29 = vld [vmem:[%s6425_s30 + $0x208] sm:$0xff]   ;;  %v3722_v12 = vadd.f32 %v7000_v44, %v3303_v16 }
 0x8fb   : > { %v3880_v32 = vmax.f32 %v3724_v9, 0.0  ;;  %v3882_v10 = vmax.f32 %v3767_v25, 0.0  ;;  %v6198_v3 = vld [vmem:[%s6425_s30 + $0x298] sm:$0xff]   ;;  %v6204_v9 = vld [vmem:[%s6425_s30 + $0x2c8] sm:$0xff]   ;;  %v3311_v25 = vrot.slane %v7015_v62, %v3278_v19  ;;  %v6207_v18 = vld [vmem:[%s6425_s30 + $0x240] sm:$0xff]   ;;  %v3331_v19 = vrot.slane %v7015_v62, %v3298_v28 }
 0x8fc   : > { %v6206_v17 = vld [vmem:[%s6425_s30 + $0x288] sm:$0xff]   ;;  %v6208_v44 = vld [vmem:[%s6425_s30 + $0x2c0] sm:$0xff]  }
 0x8fd   : > { %5833 = vmatpush3.bf16.msra.mxu1 %v6161_v40  ;;  %5855 = vmatpush3.bf16.msra.mxu0 %v6162_v42  ;;  %v3896_v38 = vpack.c.bf16 %v3880_v32, %v3864_v31  ;;  %v6184_v40 = vld [vmem:[%s6425_s30 + $0x2f0] sm:$0xff]   ;;  %v3898_v42 = vpack.c.bf16 %v3882_v10, %v3866_v27  ;;  %v3765_v14 = vadd.f32 %v7003_v56, %v3311_v25  ;;  %v6209_v54 = vld [vmem:[%s6425_s30 + $0x200] sm:$0xff]   ;;  %v3879_v10 = vmax.f32 %v3722_v12, 0.0 }
 0x8fe   : > { %5834 = vmatprep.subr.bf16.mxu1 %v6163_v43  ;;  %5856 = vmatprep.subr.bf16.mxu0 %v6164_v35  ;;  %v6185_v43 = vld [vmem:[%s6425_s30 + $0x230] sm:$0xff]   ;;  %v6210_v56 = vld [vmem:[%s6425_s30 + $0x280] sm:$0xff]   ;;  %v3319_v12 = vrot.slane %v7015_v62, %v3286_v55 }
 0x8ff   : > { %v6186_v35 = vld [vmem:[%s6425_s30 + $0x2b0] sm:$0xff]   ;;  %v3881_v28 = vmax.f32 %v3765_v14, 0.0  ;;  %v6239_v14 = vld [vmem:[%s6425_s30 + $0x340] sm:$0xff]  }
 0x901   : > { %5835 = vmatpush3.bf16.msra.mxu1 %v6165_v34  ;;  %5857 = vmatpush3.bf16.msra.mxu0 %v6166_v50  ;;  %v6188_v34 = vld [vmem:[%s6425_s30 + $0x2e8] sm:$0xff]  }
 0x902   : > { %5836 = vmatprep.subr.bf16.mxu1 %v6167_v51  ;;  %5858 = vmatprep.subr.bf16.mxu0 %v6168_v52  ;;  %v6190_v50 = vld [vmem:[%s6425_s30 + $0x2a8] sm:$0xff]   ;;  %v6191_v51 = vld [vmem:[%s6425_s30 + $0x260] sm:$0xff]  }
 0x903   : > { %v6192_v52 = vld [vmem:[%s6425_s30 + $0x2e0] sm:$0xff]  }
 0x905   : > { %5837 = vmatpush3.bf16.msra.mxu1 %v6169_v47  ;;  %5859 = vmatpush3.bf16.msra.mxu0 %v6170_v57  ;;  %v7047_v47 = vpop.f32.mrf.mxu1  ;;  %v6193_v57 = vld [vmem:[%s6425_s30 + $0x220] sm:$0xff]  }
 0x906   : > { %5838 = vmatprep.subr.bf16.mxu1 %v6171_v58  ;;  %5860 = vmatprep.subr.bf16.mxu0 %v6172_v59  ;;  %v7050_v58 = vpop.f32.mrf.mxu0  ;;  %v6194_v59 = vld [vmem:[%s6425_s30 + $0x2a0] sm:$0xff]  }
 0x907   : > { %v3805_v48 = vpop.f32.mrf.mxu1 }
 0x908   : > { %v3848_v1 = vpop.f32.mrf.mxu0 }
 0x909   : > { %5839 = vmatpush3.bf16.msra.mxu1 %v6173_v63  ;;  %5861 = vmatpush3.bf16.msra.mxu0 %v6174_v2  ;;  %v6197_v63 = vld [vmem:[%s6425_s30 + $0x218] sm:$0xff]   ;;  %v6200_v2 = vld [vmem:[%s6425_s30 + $0x2d0] sm:$0xff]   ;;  %v3849_v31 = vadd.f32 %v3848_v1, %v3331_v19  ;;  %v6225_v1 = vld [vmem:[%s6425_s30 + $0x320] sm:$0xff]  }
 0x90a   : > { %5840 = vmatprep.subr.bf16.mxu1 %v6175_v24  ;;  %5862 = vmatprep.subr.bf16.mxu0 %v6176_v5  ;;  %v7059_v24 = vpop.f32.mrf.mxu1  ;;  %v7062_v8 = vpop.f32.mrf.mxu0  ;;  %v6202_v5 = vld [vmem:[%s6425_s30 + $0x290] sm:$0xff]  }
 0x90d   : > { %5841 = vmatpush3.bf16.msra.mxu1 %v6177_v11  ;;  %5863 = vmatpush3.bf16.msra.mxu0 %v6178_v6  ;;  %v3809_v11 = vpop.f32.mrf.mxu1  ;;  %v3323_v6 = vrot.slane %v7015_v62, %v3290_v0  ;;  %v3761_v0 = vadd.f32 %v6989_v26, %v3311_v25  ;;  %v6234_v25 = vld [vmem:[%s6425_s30 + $0x390] sm:$0xff]  }
 0x90e   : > { %5870 = vmatprep.subr.bf16.mxu1 %v6179_v13  ;;  %5892 = vmatprep.subr.bf16.mxu0 %v6180_v15  ;;  %v3852_v13 = vpop.f32.mrf.mxu0  ;;  %v3718_v15 = vadd.f32 %v6986_v39, %v3303_v16  ;;  %v6233_v16 = vld [vmem:[%s6425_s30 + $0x310] sm:$0xff]  }
 0x90f   : > { %v3810_v53 = vadd.f32 %v3809_v11, %v3323_v6  ;;  %v3853_v32 = vadd.f32 %v3852_v13, %v3331_v19  ;;  %v3865_v26 = vmax.f32 %v3761_v0, 0.0  ;;  %v6235_v11 = vld [vmem:[%s6425_s30 + $0x348] sm:$0xff]  }
 0x910   : > { %5045 = vmatmul.mubr.bf16.vlgmr.msra.gmra.mxu1 %v3891_v30  ;;  %5086 = vmatmul.mubr.bf16.vlgmr.msra.gmra.mxu0 %v3893_v36  ;;  %v6211_v30 = vld [vmem:[%s6425_s30 + $0x378] sm:$0xff]   ;;  %v3863_v39 = vmax.f32 %v3718_v15, 0.0  ;;  %v6237_v13 = vld [vmem:[%s6425_s30 + $0x308] sm:$0xff]   ;;  %v3804_v15 = vadd.f32 %v7047_v47, %v3319_v12 }
 0x911   : > { %5871 = vmatpush3.bf16.msra.mxu1 %v6181_v22  ;;  %5126 = vmatprep.mubr.bf16.mxu1 %v3896_v38  ;;  %v3806_v22 = vadd.f32 %v3805_v48, %v3323_v6  ;;  %v3884_v36 = vmax.f32 %v3810_v53, 0.0  ;;  %v3886_v27 = vmax.f32 %v3853_v32, 0.0  ;;  %v6223_v48 = vld [vmem:[%s6425_s30 + $0x360] sm:$0xff]   ;;  %v3327_v6 = vrot.slane %v7015_v62, %v3294_v41 }
 0x912   : > { %5893 = vmatpush3.bf16.msra.mxu0 %v6182_v33  ;;  %5167 = vmatprep.mubr.bf16.mxu0 %v3898_v42  ;;  %v6212_v33 = vld [vmem:[%s6425_s30 + $0x3f8] sm:$0xff]   ;;  %v3895_v38 = vpack.c.bf16 %v3879_v10, %v3863_v39  ;;  %v6242_v62 = vld [vmem:[%s6425_s30 + $0x380] sm:$0xff]  }
 0x913   : > { %5872 = vmatprep.subr.bf16.mxu1 %v6183_v45  ;;  %5894 = vmatprep.subr.bf16.mxu0 %v6184_v40  ;;  %v6213_v45 = vld [vmem:[%s6425_s30 + $0x338] sm:$0xff]   ;;  %v3868_v40 = vmax.f32 %v3806_v22, 0.0  ;;  %v3851_v19 = vadd.f32 %v7062_v8, %v3327_v6  ;;  %v3847_v55 = vadd.f32 %v7050_v58, %v3327_v6 }
 0x914   : > { %v6214_v42 = vld [vmem:[%s6425_s30 + $0x3b8] sm:$0xff]  }
 0x915   : > { %5873 = vmatpush3.bf16.msra.mxu1 %v6185_v43  ;;  %v3897_v43 = vpack.c.bf16 %v3881_v28, %v3865_v26  ;;  %v3885_v53 = vmax.f32 %v3851_v19, 0.0  ;;  %v3869_v0 = vmax.f32 %v3847_v55, 0.0 }
 0x916   : > { %5895 = vmatpush3.bf16.msra.mxu0 %v6186_v35  ;;  %5874 = vmatprep.subr.bf16.mxu1 %v6187_v46  ;;  %v3870_v35 = vmax.f32 %v3849_v31, 0.0  ;;  %v6215_v46 = vld [vmem:[%s6425_s30 + $0x370] sm:$0xff]  }
 0x917   : > { %5896 = vmatprep.subr.bf16.mxu0 %v6188_v34  ;;  %v3900_v34 = vpack.c.bf16 %v3884_v36, %v3868_v40  ;;  %v3901_v8 = vpack.c.bf16 %v3885_v53, %v3869_v0  ;;  %v4928_v40 = vpop.permute.xlu1 %4927 }
 0x919   : > { %5875 = vmatpush3.bf16.msra.mxu1 %v6189_v49  ;;  %v6216_v49 = vld [vmem:[%s6425_s30 + $0x3f0] sm:$0xff]  }
 0x91a   : > { %5897 = vmatpush3.bf16.msra.mxu0 %v6190_v50  ;;  %5876 = vmatprep.subr.bf16.mxu1 %v6191_v51  ;;  %v3902_v50 = vpack.c.bf16 %v3886_v27, %v3870_v35  ;;  %v6217_v51 = vld [vmem:[%s6425_s30 + $0x330] sm:$0xff]  }
 0x91b   : > { %5898 = vmatprep.subr.bf16.mxu0 %v6192_v52  ;;  %v6218_v52 = vld [vmem:[%s6425_s30 + $0x3b0] sm:$0xff]  }
 0x91d   : > { %5877 = vmatpush3.bf16.msra.mxu1 %v6193_v57  ;;  %v6219_v57 = vld [vmem:[%s6425_s30 + $0x368] sm:$0xff]  }
 0x91e   : > { %5899 = vmatpush3.bf16.msra.mxu0 %v6194_v59  ;;  %5878 = vmatprep.subr.bf16.mxu1 %v6195_v60  ;;  %v6220_v59 = vld [vmem:[%s6425_s30 + $0x3e8] sm:$0xff]  }
 0x91f   : > { %5900 = vmatprep.subr.bf16.mxu0 %v6196_v61  ;;  %v6221_v60 = vld [vmem:[%s6425_s30 + $0x328] sm:$0xff]  }
 0x920   : > { %v6222_v61 = vld [vmem:[%s6425_s30 + $0x3a8] sm:$0xff]  }
 0x921   : > { %5879 = vmatpush3.bf16.msra.mxu1 %v6197_v63  ;;  %v6224_v63 = vld [vmem:[%s6425_s30 + $0x3e0] sm:$0xff]  }
 0x922   : > { %5901 = vmatpush3.bf16.msra.mxu0 %v6198_v3  ;;  %5880 = vmatprep.subr.bf16.mxu1 %v6199_v4  ;;  %v6226_v3 = vld [vmem:[%s6425_s30 + $0x3a0] sm:$0xff]   ;;  %v6227_v4 = vld [vmem:[%s6425_s30 + $0x358] sm:$0xff]  }
 0x923   : > { %5902 = vmatprep.subr.bf16.mxu0 %v6200_v2  ;;  %v6228_v2 = vld [vmem:[%s6425_s30 + $0x3d8] sm:$0xff]  }
 0x925   : > { %5881 = vmatpush3.bf16.msra.mxu1 %v6201_v21  ;;  %v6229_v21 = vld [vmem:[%s6425_s30 + $0x318] sm:$0xff]  }
 0x926   : > { %5903 = vmatpush3.bf16.msra.mxu0 %v6202_v5  ;;  %5882 = vmatprep.subr.bf16.mxu1 %v6203_v20  ;;  %v6230_v5 = vld [vmem:[%s6425_s30 + $0x398] sm:$0xff]   ;;  %v6231_v20 = vld [vmem:[%s6425_s30 + $0x350] sm:$0xff]  }
 0x927   : > { %5904 = vmatprep.subr.bf16.mxu0 %v6204_v9  ;;  %v6232_v9 = vld [vmem:[%s6425_s30 + $0x3d0] sm:$0xff]  }
 0x929   : > { %5883 = vmatpush3.bf16.msra.mxu1 %v6205_v29  ;;  %v6236_v29 = vld [vmem:[%s6425_s30 + $0x3c8] sm:$0xff]  }
 0x92a   : > { %5905 = vmatpush3.bf16.msra.mxu0 %v6206_v17  ;;  %5884 = vmatprep.subr.bf16.mxu1 %v6207_v18  ;;  %v3808_v17 = vadd.f32 %v7059_v24, %v3319_v12  ;;  %v6238_v18 = vld [vmem:[%s6425_s30 + $0x388] sm:$0xff]   ;;  %v3867_v24 = vmax.f32 %v3804_v15, 0.0 }
 0x92b   : > { %5906 = vmatprep.subr.bf16.mxu0 %v6208_v44  ;;  %v6240_v44 = vld [vmem:[%s6425_s30 + $0x3c0] sm:$0xff]  }
 0x92c   : > { %v3883_v41 = vmax.f32 %v3808_v17, 0.0 }
 0x92d   : > { %5885 = vmatpush3.bf16.msra.mxu1 %v6209_v54 }
 0x92e   : > { %5907 = vmatpush3.bf16.msra.mxu0 %v6210_v56  ;;  %5914 = vmatprep.subr.bf16.mxu1 %v6211_v30  ;;  %v3899_v32 = vpack.c.bf16 %v3883_v41, %v3867_v24 }
 0x92f   : > { %5936 = vmatprep.subr.bf16.mxu0 %v6212_v33 }
 0x930   : > { %5127 = vmatmul.mubr.bf16.vlgmr.msra.gmra.mxu1 %v3895_v38 }
 0x931   : > { %5168 = vmatmul.mubr.bf16.vlgmr.msra.gmra.mxu0 %v3897_v43  ;;  %5915 = vmatpush3.bf16.msra.mxu1 %v6213_v45 }
 0x932   : > { %5208 = vmatprep.mubr.bf16.mxu1 %v3900_v34  ;;  %5937 = vmatpush3.bf16.msra.mxu0 %v6214_v42 }
 0x933   : > { %5249 = vmatprep.mubr.bf16.mxu0 %v3902_v50  ;;  %5916 = vmatprep.subr.bf16.mxu1 %v6215_v46 }
 0x934   : > { %5938 = vmatprep.subr.bf16.mxu0 %v6216_v49 }
 0x935   : > { %5917 = vmatpush3.bf16.msra.mxu1 %v6217_v51 }
 0x936   : > { %5939 = vmatpush3.bf16.msra.mxu0 %v6218_v52  ;;  %5918 = vmatprep.subr.bf16.mxu1 %v6219_v57 }
 0x937   : > { %5940 = vmatprep.subr.bf16.mxu0 %v6220_v59 }
 0x939   : > { %5919 = vmatpush3.bf16.msra.mxu1 %v6221_v60 }
 0x93a   : > { %5941 = vmatpush3.bf16.msra.mxu0 %v6222_v61  ;;  %5920 = vmatprep.subr.bf16.mxu1 %v6223_v48 }
 0x93b   : > { %5942 = vmatprep.subr.bf16.mxu0 %v6224_v63 }
 0x93d   : > { %5921 = vmatpush3.bf16.msra.mxu1 %v6225_v1 }
 0x93e   : > { %5943 = vmatpush3.bf16.msra.mxu0 %v6226_v3  ;;  %5922 = vmatprep.subr.bf16.mxu1 %v6227_v4 }
 0x93f   : > { %5944 = vmatprep.subr.bf16.mxu0 %v6228_v2 }
 0x941   : > { %5923 = vmatpush3.bf16.msra.mxu1 %v6229_v21 }
 0x942   : > { %5945 = vmatpush3.bf16.msra.mxu0 %v6230_v5  ;;  %5924 = vmatprep.subr.bf16.mxu1 %v6231_v20 }
 0x943   : > { %5946 = vmatprep.subr.bf16.mxu0 %v6232_v9 }
 0x945   : > { %5925 = vmatpush3.bf16.msra.mxu1 %v6233_v16 }
 0x946   : > { %5947 = vmatpush3.bf16.msra.mxu0 %v6234_v25  ;;  %5926 = vmatprep.subr.bf16.mxu1 %v6235_v11 }
 0x947   : > { %5948 = vmatprep.subr.bf16.mxu0 %v6236_v29 }
 0x949   : > { %5927 = vmatpush3.bf16.msra.mxu1 %v6237_v13 }
 0x94a   : > { %5949 = vmatpush3.bf16.msra.mxu0 %v6238_v18  ;;  %5928 = vmatprep.subr.bf16.mxu1 %v6239_v14 }
 0x94b   : > { %5950 = vmatprep.subr.bf16.mxu0 %v6240_v44 }
 0x94d   : > { %5929 = vmatpush3.bf16.msra.mxu1 %v6241_v37 }
 0x94e   : > { %5951 = vmatpush3.bf16.msra.mxu0 %v6242_v62 }
 0x950   : > { %5209 = vmatmul.mubr.bf16.vlgmr.msra.gmra.mxu1 %v3899_v32 }
 0x951   : > { %5250 = vmatmul.mubr.bf16.vlgmr.msra.gmra.mxu0 %v3901_v8 }
 0x9b0   : > { %v5798_v54 = vpop.f32.mrf.mxu1  ;;  %v5820_v47 = vpop.f32.mrf.mxu0 }
 0x9b2   : > { %v5799_v10 = vpop.f32.mrf.mxu1  ;;  %v5821_v58 = vpop.f32.mrf.mxu0 }
 0x9b3   : > { %v5800_v38 = vadd.f32 %v5799_v10, %v5798_v54  ;;  %v5822_v50 = vadd.f32 %v5821_v58, %v5820_v47 }
 0x9b4   : > { %v5801_v22 = vpop.f32.mrf.mxu1  ;;  %v5823_v56 = vpop.f32.mrf.mxu0 }
 0x9b5   : > { %v4965_v35 = vadd.f32 %v5800_v38, %v4928_v40 }
 0x9b6   : > { %v5802_v30 = vpop.f32.mrf.mxu1  ;;  %v5824_v31 = vpop.f32.mrf.mxu0 }
 0x9b7   : > { %v5803_v46 = vadd.f32 %v5802_v30, %v5801_v22  ;;  %v5006_v52 = vadd.f32 %v5822_v50, %v4965_v35  ;;  %v5825_v61 = vadd.f32 %v5824_v31, %v5823_v56 }
 0x9b9   : > { %v4968_v57 = vadd.f32 %v5803_v46, %v4928_v40  ;;  %v6286_v40 = vld [vmem:[%s6430_s19 + $0x11] ss:$0 sm:$0xff] }
 0x9bb   : > { %v5009_v1 = vadd.f32 %v5825_v61, %v4968_v57 }
 0x9d0   : > { %v5842_v28 = vpop.f32.mrf.mxu1  ;;  %v5864_v33 = vpop.f32.mrf.mxu0 }
 0x9d2   : > { %v5843_v39 = vpop.f32.mrf.mxu1  ;;  %v5865_v36 = vpop.f32.mrf.mxu0 }
 0x9d3   : > { %v5844_v51 = vadd.f32 %v5843_v39, %v5842_v28  ;;  %v5866_v3 = vadd.f32 %v5865_v36, %v5864_v33 }
 0x9d4   : > { %v5845_v26 = vpop.f32.mrf.mxu1  ;;  %v5867_v27 = vpop.f32.mrf.mxu0 }
 0x9d5   : > { %v5047_v48 = vadd.f32 %v5844_v51, %v5006_v52  ;;  %v5722_v52 = vld [vmem:[%s6430_s19 + $0x12] ss:$0 sm:$0xff] }
 0x9d6   : > { %v5846_v45 = vpop.f32.mrf.mxu1  ;;  %v5868_v43 = vpop.f32.mrf.mxu0 }
 0x9d7   : > { %v5847_v63 = vadd.f32 %v5846_v45, %v5845_v26  ;;  %v5088_v5 = vadd.f32 %v5866_v3, %v5047_v48  ;;  %v5869_v9 = vadd.f32 %v5868_v43, %v5867_v27 }
 0x9d9   : > { %v5050_v20 = vadd.f32 %v5847_v63, %v5009_v1 }
 0x9db   : > { %v5091_v12 = vadd.f32 %v5869_v9, %v5050_v20 }
 0x9f0   : > { %v5886_v42 = vpop.f32.mrf.mxu1 }
 0x9f1   : > { %v5908_v34 = vpop.f32.mrf.mxu0 }
 0x9f2   : > { %v5887_v49 = vpop.f32.mrf.mxu1 }
 0x9f3   : > { %v5909_v59 = vpop.f32.mrf.mxu0  ;;  %v5888_v4 = vadd.f32 %v5887_v49, %v5886_v42 }
 0x9f4   : > { %v5889_v60 = vpop.f32.mrf.mxu1  ;;  %v5910_v6 = vadd.f32 %v5909_v59, %v5908_v34 }
 0x9f5   : > { %v5911_v2 = vpop.f32.mrf.mxu0  ;;  %v5129_v16 = vadd.f32 %v5888_v4, %v5088_v5 }
 0x9f6   : > { %v5890_v21 = vpop.f32.mrf.mxu1 }
 0x9f7   : > { %v5891_v25 = vadd.f32 %v5890_v21, %v5889_v60  ;;  %v5912_v11 = vpop.f32.mrf.mxu0  ;;  %v5170_v18 = vadd.f32 %v5910_v6, %v5129_v16 }
 0x9f8   : > { %v5913_v55 = vadd.f32 %v5912_v11, %v5911_v2 }
 0x9f9   : > { %v5132_v14 = vadd.f32 %v5891_v25, %v5091_v12 }
 0x9fb   : > { %v5173_v24 = vadd.f32 %v5913_v55, %v5132_v14 }
 0xa10   : > { %v5930_v29 = vpop.f32.mrf.mxu1 }
 0xa11   : > { %v5952_v13 = vpop.f32.mrf.mxu0 }
 0xa12   : > { %v5931_v17 = vpop.f32.mrf.mxu1 }
 0xa13   : > { %v5932_v19 = vadd.f32 %v5931_v17, %v5930_v29  ;;  %v5953_v44 = vpop.f32.mrf.mxu0 }
 0xa14   : > { %v5933_v15 = vpop.f32.mrf.mxu1  ;;  %v5954_v41 = vadd.f32 %v5953_v44, %v5952_v13 }
 0xa15   : > { %v5211_v37 = vadd.f32 %v5932_v19, %v5170_v18  ;;  %v5955_v62 = vpop.f32.mrf.mxu0 }
 0xa16   : > { %v5934_v53 = vpop.f32.mrf.mxu1 }
 0xa17   : > { %v5252_v0 = vadd.f32 %v5954_v41, %v5211_v37  ;;  %v5935_v32 = vadd.f32 %v5934_v53, %v5933_v15  ;;  %v5956_v8 = vpop.f32.mrf.mxu0 }
 0xa18   : > { %v5957_v47 = vadd.f32 %v5956_v8, %v5955_v62 }
 0xa19   : > { %v5214_v54 = vadd.f32 %v5935_v32, %v5173_v24  ;;  %v5258_v10 = vadd.f32 %v5252_v0, %v6859_v7 }
 0xa1b   : > { %v5255_v58 = vadd.f32 %v5957_v47, %v5214_v54  ;;  %v5260_v22 = vsel %vm536_vm2, %v5258_v10, 0.0 }
 0xa1c   : > { %5261 = vadd.xlane.f32.xlu1 %v5260_v22 }
 0xa1d   : > { %v5259_v56 = vadd.f32 %v5255_v58, %v6861_v23 }
 0xa1f   : > { %v5263_v30 = vsel %vm536_vm2, %v5259_v56, 0.0 }
 0xa20   : > { %5264 = vadd.xlane.f32.xlu0 %v5263_v30 }
 0xaa5   : > { %v5262_v28 = vpop.xlane.xlu1 %5261 }
 0xaa6   : > { %v5266_v31 = vmul.f32 0.03125, %v5262_v28 }
 0xaa8   : > { %v5268_v33 = vsub.f32 %v5258_v10, %v5266_v31 }
 0xaa9   : > { %v5265_v39 = vpop.xlane.xlu0 %5264 }
 0xaaa   : > { %v5267_v36 = vmul.f32 0.03125, %v5265_v39  ;;  %v5270_v26 = vmul.f32 %v5268_v33, %v5268_v33 }
 0xaac   : > { %v5269_v27 = vsub.f32 %v5259_v56, %v5267_v36  ;;  %v5272_v45 = vsel %vm536_vm2, %v5270_v26, 0.0 }
 0xaad   : > { %5273 = vadd.xlane.f32.xlu0 %v5272_v45 }
 0xaae   : > { %v5271_v7 = vmul.f32 %v5269_v27, %v5269_v27 }
 0xab0   : > { %v5275_v38 = vsel %vm536_vm2, %v5271_v7, 0.0 }
 0xab1   : > { %5276 = vadd.xlane.f32.xlu1 %v5275_v38 }
 0xac3   : > { %5286 = vrot.lane.b32.xlu0 %v6286_v40, %s6335_s23 }
 0xb36   : > { %v5274_v23 = vpop.xlane.xlu0 %5273 }
 0xb37   : > { %v5278_v42 = vmul.f32 0.03125, %v5274_v23 }
 0xb39   : > { %v5280_v43 = vadd.f32 1e-05, %v5278_v42 }
 0xb3a   : > { %v5277_v35 = vpop.xlane.xlu1 %5276  ;;  %v5287_v50 = vpop.permute.xlu0 %5286 }
 0xb3b   : > { %6279 = vrsqrt.f32 %v5280_v43  ;;  %v5279_v46 = vmul.f32 0.03125, %v5277_v35 }
 0xb3d   : > { %v5281_v34 = vadd.f32 1e-05, %v5279_v46 }
 0xb3f   : > { %6281 = vrsqrt.f32 %v5281_v34 }
 0xb48   : > { %v6280_v49 = vpop.eup %6279 }
 0xb49   : > { %v5284_v51 = vmul.f32 %v6280_v49, %v5268_v33 }
 0xb4b   : > { %v5289_v57 = vmul.f32 %v5287_v50, %v5284_v51 }
 0xb4c   : > { %v6282_v59 = vpop.eup %6281 }
 0xb4d   : > { %v5285_v60 = vmul.f32 %v6282_v59, %v5269_v27  ;;  %v5297_v61 = vadd.f32 %v5722_v52, %v5289_v57 }
 0xb4f   : > { %v5290_v48 = vmul.f32 %v5287_v50, %v5285_v60  ;;  %5299 = vst.msk [vmem:[#allocation2] sm:$0xff] %vm536_vm2, %v5297_v61  ;;  %5304 = sbr.rel (%p5723_p5) target bundleno = 3105 (0xc21), region = 68 }
 0xb51   : > { %v5298_v63 = vadd.f32 %v5722_v52, %v5290_v48 }
 0xb53   : > { %5300 = vst.msk [vmem:[#allocation2 + $0x8] sm:$0xff] %vm536_vm2, %v5298_v63 }
 0xb54   : > { %v5316_v1 = vld [vmem:[%s7182_s8 + $0x18] sm:$0xff]  ;;  %v6337_v3 = vmov 0.0   ;;  %v5315_v4 = vld [vmem:[%s7182_s8 + $0x10] sm:$0xff]  ;;  %vm6338_vm7 = vmmov 0   ;;  %v5306_v2 = vrot.slane %v5297_v61, 7  ;;  %v5309_v21 = vrot.slane %v5298_v63, 6 }
 0xb55   : > { %6072 = vmatprep.subr.mxu0 %v6337_v3  ;;  %6080 = vmatprep.mubr.msk.f32.mxu0 %vm6338_vm7, %v6337_v3  ;;  %v5314_v5 = vld [vmem:[%s7182_s8 + $0x8] sm:$0xff]  ;;  %vm5311_vm8 = vcmask 1040384   ;;  %v5313_v20 = vld [vmem:[%s7182_s8] sm:$0xff]  ;;  %vm5397_vm9 = vcmask 17408  }
 0xb56   : > { %6073 = vmatpush3.msra.mxu0 %v5316_v1  ;;  %v5312_v9 = vsel %vm5311_vm8, %v5306_v2, %v5309_v21  ;;  %v5724_v16 = vld [vmem:[%s7183_s9] ss:$0 sm:$0xff] }
 0xb57   : > { %6074 = vmatprep.subr.mxu0 %v6337_v3 }
 0xb58   : > { %6075 = vmatpush3.msra.mxu0 %v5315_v4 }
 0xb59   : > { %6076 = vmatprep.subr.mxu0 %v6337_v3 }
 0xb5a   : > { %6077 = vmatpush3.msra.mxu0 %v5314_v5 }
 0xb5b   : > { %6078 = vmatprep.subr.mxu0 %v6337_v3 }
 0xb5c   : > { %6079 = vmatpush3.msra.mxu0 %v5313_v20 }
 0xb5d   : > { %6081 = vmatmul.mubr.msk.f32.vlgmr.msra.gmra.mxu0 %vm536_vm2, %v5312_v9 }
 0xc1d   : > { %v5393_v25 = vpop.f32.mrf.mxu0 }
 0xc1e   : > { %v5394_v11 = vadd.f32 %v5724_v16, %v5393_v25 }
 0xc1f   : > { %v6082_v29 = vpop.f32.mrf.mxu0 }
 0xc20   : > { %5398 = vst.msk [vmem:[#allocation3] sm:$0x3] %vm5397_vm9, %v5394_v11 }
 0xc21 PF: > { %p6088_p6 = scmp.eq.s32.totalorder %s6401_s14, 1  ;;  %s6339_s16 = smov [#allocation3]  }
 0xc22   : > { %s5406_s20 = sshll.u32 %s6339_s16, 4  ;;  %s5407_s20 = int_to_ptr.vmem [resolvable:$true] %s5406_s20 }
 0xc23   : > { %s6287_s21 = scalar_lea.vmem %s5407_s20, 32  ;;  %p6294_p10 = scmp.lt.s32.totalorder %s5407_s20, %s5407_s20 }
 0xc24   : > { %p6288_p7 = scmp.ne.s32.totalorder %s5407_s20, %s6287_s21  ;;  %p6295_p11 = scmp.lt.s32.totalorder %s6287_s21, %s6287_s21 }
 0xc26   : > { %p6289_p8 = pnand %p6288_p7, %p6088_p6  ;;  %p6296_p12 = por %p6295_p11, %p6294_p10 }
 0xc28   : > { %p6290_p9 = pneg %p6289_p8 }
 0xc2a   : > { %p6297_p13 = pnand %p6296_p12, %p6290_p9 }
 0xc2c   : > { %6300 = shalt.err (!%p6297_p13)
}
 0xc2d   : > { %6085 = dma.vmem_to_hbm [thread:$0]  (%p6088_p6), %s5407_s20, 32, %s7184_s10, [#allocation4]  }
 0xc2e   : > { %6316 = dma.done.wait (%p6088_p6), [#allocation4], 32  }
 0xc2f   : > { %6318 = vsyncadd (%p6088_p6), [#allocation4], 4294967264 }
 0xc30 PF: > { %s21_s13 = sadd.s32 1, %s6321_s13  }
 0xc31   : > { %p18_p0 = scmp.ge.s32.totalorder %s21_s13, 4  }
 0xc33   :  { %20 = sbr.rel (!%p18_p0) target bundleno = 1 (0x1), region = 107 }
 0xc38   :  { %5419 = vsyncpa [#allocation4], 1 }
 0xc39   :  { %5421 = vsyncpa [#allocation4 + $0x1], 1 }

</bundles_post_ra>
